<compile_context>
chip_gen: v7x
topology: tpu7x:2x2x1
jax: 0.10.0
libtpu: 0.0.40
codegen_flags: <defaults>
</compile_context>

<pallas_src>
import jax
import jax.numpy as jnp
from jax.experimental import pallas as pl
from jax.experimental.pallas import tpu as pltpu

J, K, D = 64, 91, 3  # fixed by the module: 64 rotation/translation params, 91 points, 3-D coords


def _align_kernel(r_ref, t_ref, pred_ref, out_ref):
    # r_ref    : (J, 3)     VMEM  raw rotation parameters
    # t_ref    : (J, 3)     VMEM  translations
    # pred_ref : (3, J, K)  VMEM  input coordinates, coordinate-major (lane-dense)
    # out_ref  : (3, J, K)  VMEM  output coordinates, coordinate-major

    # ---- quaternion -> rotation matrix entries, vectorized over all J rows ----
    r = r_ref[...]                                   # (J, 3)
    b = r[:, 0:1]                                    # (J, 1)
    c = r[:, 1:2]
    d = r[:, 2:3]
    inv = jax.lax.rsqrt(1.0 + b * b + c * c + d * d)  # exact rsqrt (EUP), keeps 1e-4 parity
    a = inv
    b = b * inv
    c = c * inv
    d = d * inv

    aa = a * a; bb = b * b; cc = c * c; dd = d * d
    ab = a * b; ac = a * c; ad = a * d
    bc = b * c; bd = b * d; cd = c * d

    # Nine rotation entries R[m, n], each a (J, 1) column (broadcasts along lanes).
    r00 = aa + bb - cc - dd; r01 = 2.0 * (bc - ad);  r02 = 2.0 * (bd + ac)
    r10 = 2.0 * (bc + ad);   r11 = aa - bb + cc - dd; r12 = 2.0 * (cd - ab)
    r20 = 2.0 * (bd - ac);   r21 = 2.0 * (cd + ab);   r22 = aa - bb - cc + dd

    t0 = t_ref[:, 0:1]; t1 = t_ref[:, 1:2]; t2 = t_ref[:, 2:3]   # (J, 1) each

    # ---- rotate + translate: per-component whole-plane FMAs on (J, K) ----
    x0 = pred_ref[0]                                 # (J, K)
    x1 = pred_ref[1]
    x2 = pred_ref[2]

    out_ref[0] = x0 * r00 + x1 * r10 + x2 * r20 + t0
    out_ref[1] = x0 * r01 + x1 * r11 + x2 * r21 + t1
    out_ref[2] = x0 * r02 + x1 * r12 + x2 * r22 + t2


def _align_call(r_vector, t_vector, pred_cmaj):
    """pred_cmaj: (3, J, K) f32 -> (3, J, K) f32."""
    return pl.pallas_call(
        _align_kernel,
        out_shape=jax.ShapeDtypeStruct((D, J, K), jnp.float32),
        # No grid: whole (<1 MiB) problem runs as a single VMEM block.
        in_specs=[
            pl.BlockSpec(memory_space=pltpu.MemorySpace.VMEM),   # r_vector  (J, 3)
            pl.BlockSpec(memory_space=pltpu.MemorySpace.VMEM),   # t_vector  (J, 3)
            pl.BlockSpec(memory_space=pltpu.MemorySpace.VMEM),   # pred      (3, J, K)
        ],
        out_specs=pl.BlockSpec(memory_space=pltpu.MemorySpace.VMEM),
    )(r_vector, t_vector, pred_cmaj)


def align_forward(pred_coor, r_vector, t_vector):
    """pred_coor: (J, K, 3) f32; r_vector, t_vector: (J, 3) f32 -> (J, K, 3) f32.

    Note: inputs are cast to f32 for parity with the f32 PyTorch module.
    """
    pred_cmaj = jnp.transpose(pred_coor.astype(jnp.float32), (2, 0, 1))   # (3, J, K)
    out_cmaj = _align_call(
        r_vector.astype(jnp.float32),
        t_vector.astype(jnp.float32),
        pred_cmaj,
    )
    return jnp.transpose(out_cmaj, (1, 2, 0))                             # (J, K, 3)


def _reference(pred_coor, r_vector, t_vector):
    """Pure-JAX reference matching the PyTorch module."""
    b, c, d = r_vector[:, 0], r_vector[:, 1], r_vector[:, 2]
    norm = jnp.sqrt(1.0 + b ** 2 + c ** 2 + d ** 2)
    a = 1.0 / norm
    b = b / norm
    c = c / norm
    d = d / norm
    r = jnp.stack(
        [
            a ** 2 + b ** 2 - c ** 2 - d ** 2, 2 * b * c - 2 * a * d, 2 * b * d + 2 * a * c,
            2 * b * c + 2 * a * d, a ** 2 - b ** 2 + c ** 2 - d ** 2, 2 * c * d - 2 * a * b,
            2 * b * d - 2 * a * c, 2 * c * d + 2 * a * b, a ** 2 - b ** 2 - c ** 2 + d ** 2,
        ],
        axis=-1,
    ).reshape(J, 3, 3)
    return jnp.einsum("jkm,jmn->jkn", pred_coor, r) + t_vector[:, None, :]


if __name__ == "__main__":
    key = jax.random.PRNGKey(0)
    k_pred, k_r, k_t = jax.random.split(key, 3)

    pred_coor = jax.random.normal(k_pred, (J, K, D), dtype=jnp.float32)
    r_vector = jax.random.normal(k_r, (J, D), dtype=jnp.float32)
    t_vector = jax.random.normal(k_t, (J, D), dtype=jnp.float32)

    out = jax.jit(align_forward)(pred_coor, r_vector, t_vector)
    out = jax.block_until_ready(out)

    ref = _reference(pred_coor, r_vector, t_vector)
    assert out.shape == (J, K, D), out.shape
    max_err = float(jnp.max(jnp.abs(out - ref)))
    assert jnp.allclose(out, ref, atol=1e-4, rtol=1e-4), max_err

    print("KERNEL_OK")
</pallas_src>

<mosaic_0001>
module attributes {stable_mosaic.version = 11 : i64} {
  func.func @_align_kernel(%arg0: memref<64x3xf32, #tpu.memory_space<vmem>>, %arg1: memref<64x3xf32, #tpu.memory_space<vmem>>, %arg2: memref<3x64x91xf32, #tpu.memory_space<vmem>>, %arg3: memref<3x64x91xf32, #tpu.memory_space<vmem>>) attributes {dimension_semantics = [], scalar_prefetch = 0 : i64, scratch_operands = 0 : i64, tpu.core_type = #tpu.core_type<tc>} {
    %c0 = arith.constant 0 : index
    %c0_0 = arith.constant 0 : index
    %0 = vector.load %arg0[%c0, %c0_0] : memref<64x3xf32, #tpu.memory_space<vmem>>, vector<64x3xf32>
    %1 = vector.extract_strided_slice %0 {offsets = [0, 0], sizes = [64, 1], strides = [1, 1]} : vector<64x3xf32> to vector<64x1xf32>
    %2 = vector.extract_strided_slice %0 {offsets = [0, 1], sizes = [64, 1], strides = [1, 1]} : vector<64x3xf32> to vector<64x1xf32>
    %3 = vector.extract_strided_slice %0 {offsets = [0, 2], sizes = [64, 1], strides = [1, 1]} : vector<64x3xf32> to vector<64x1xf32>
    %4 = arith.mulf %1, %1 : vector<64x1xf32>
    %cst = arith.constant 1.000000e+00 : f32
    %5 = vector.broadcast %cst : f32 to vector<64x1xf32>
    %6 = arith.addf %5, %4 : vector<64x1xf32>
    %7 = arith.mulf %2, %2 : vector<64x1xf32>
    %8 = arith.addf %6, %7 : vector<64x1xf32>
    %9 = arith.mulf %3, %3 : vector<64x1xf32>
    %10 = arith.addf %8, %9 : vector<64x1xf32>
    %11 = math.rsqrt %10 : vector<64x1xf32>
    %12 = arith.mulf %1, %11 : vector<64x1xf32>
    %13 = arith.mulf %2, %11 : vector<64x1xf32>
    %14 = arith.mulf %3, %11 : vector<64x1xf32>
    %15 = arith.mulf %11, %11 : vector<64x1xf32>
    %16 = arith.mulf %12, %12 : vector<64x1xf32>
    %17 = arith.mulf %13, %13 : vector<64x1xf32>
    %18 = arith.mulf %14, %14 : vector<64x1xf32>
    %19 = arith.mulf %11, %12 : vector<64x1xf32>
    %20 = arith.mulf %11, %13 : vector<64x1xf32>
    %21 = arith.mulf %11, %14 : vector<64x1xf32>
    %22 = arith.mulf %12, %13 : vector<64x1xf32>
    %23 = arith.mulf %12, %14 : vector<64x1xf32>
    %24 = arith.mulf %13, %14 : vector<64x1xf32>
    %25 = arith.addf %15, %16 : vector<64x1xf32>
    %26 = arith.subf %25, %17 : vector<64x1xf32>
    %27 = arith.subf %26, %18 : vector<64x1xf32>
    %28 = arith.subf %22, %21 : vector<64x1xf32>
    %cst_1 = arith.constant 2.000000e+00 : f32
    %29 = vector.broadcast %cst_1 : f32 to vector<64x1xf32>
    %30 = arith.mulf %29, %28 : vector<64x1xf32>
    %31 = arith.addf %23, %20 : vector<64x1xf32>
    %cst_2 = arith.constant 2.000000e+00 : f32
    %32 = vector.broadcast %cst_2 : f32 to vector<64x1xf32>
    %33 = arith.mulf %32, %31 : vector<64x1xf32>
    %34 = arith.addf %22, %21 : vector<64x1xf32>
    %cst_3 = arith.constant 2.000000e+00 : f32
    %35 = vector.broadcast %cst_3 : f32 to vector<64x1xf32>
    %36 = arith.mulf %35, %34 : vector<64x1xf32>
    %37 = arith.subf %15, %16 : vector<64x1xf32>
    %38 = arith.addf %37, %17 : vector<64x1xf32>
    %39 = arith.subf %38, %18 : vector<64x1xf32>
    %40 = arith.subf %24, %19 : vector<64x1xf32>
    %cst_4 = arith.constant 2.000000e+00 : f32
    %41 = vector.broadcast %cst_4 : f32 to vector<64x1xf32>
    %42 = arith.mulf %41, %40 : vector<64x1xf32>
    %43 = arith.subf %23, %20 : vector<64x1xf32>
    %cst_5 = arith.constant 2.000000e+00 : f32
    %44 = vector.broadcast %cst_5 : f32 to vector<64x1xf32>
    %45 = arith.mulf %44, %43 : vector<64x1xf32>
    %46 = arith.addf %24, %19 : vector<64x1xf32>
    %cst_6 = arith.constant 2.000000e+00 : f32
    %47 = vector.broadcast %cst_6 : f32 to vector<64x1xf32>
    %48 = arith.mulf %47, %46 : vector<64x1xf32>
    %49 = arith.subf %15, %16 : vector<64x1xf32>
    %50 = arith.subf %49, %17 : vector<64x1xf32>
    %51 = arith.addf %50, %18 : vector<64x1xf32>
    %c0_7 = arith.constant 0 : index
    %c0_8 = arith.constant 0 : index
    %52 = vector.load %arg1[%c0_7, %c0_8] : memref<64x3xf32, #tpu.memory_space<vmem>>, vector<64x1xf32>
    %c0_9 = arith.constant 0 : index
    %c1 = arith.constant 1 : index
    %53 = vector.load %arg1[%c0_9, %c1] : memref<64x3xf32, #tpu.memory_space<vmem>>, vector<64x1xf32>
    %c0_10 = arith.constant 0 : index
    %c2 = arith.constant 2 : index
    %54 = vector.load %arg1[%c0_10, %c2] : memref<64x3xf32, #tpu.memory_space<vmem>>, vector<64x1xf32>
    %c0_11 = arith.constant 0 : index
    %c0_12 = arith.constant 0 : index
    %c0_13 = arith.constant 0 : index
    %55 = vector.load %arg2[%c0_11, %c0_12, %c0_13] : memref<3x64x91xf32, #tpu.memory_space<vmem>>, vector<1x64x91xf32>
    %56 = vector.shape_cast %55 : vector<1x64x91xf32> to vector<64x91xf32>
    %c1_14 = arith.constant 1 : index
    %c0_15 = arith.constant 0 : index
    %c0_16 = arith.constant 0 : index
    %57 = vector.load %arg2[%c1_14, %c0_15, %c0_16] : memref<3x64x91xf32, #tpu.memory_space<vmem>>, vector<1x64x91xf32>
    %58 = vector.shape_cast %57 : vector<1x64x91xf32> to vector<64x91xf32>
    %c2_17 = arith.constant 2 : index
    %c0_18 = arith.constant 0 : index
    %c0_19 = arith.constant 0 : index
    %59 = vector.load %arg2[%c2_17, %c0_18, %c0_19] : memref<3x64x91xf32, #tpu.memory_space<vmem>>, vector<1x64x91xf32>
    %60 = vector.shape_cast %59 : vector<1x64x91xf32> to vector<64x91xf32>
    %61 = vector.broadcast %27 : vector<64x1xf32> to vector<64x91xf32>
    %62 = arith.mulf %56, %61 : vector<64x91xf32>
    %63 = vector.broadcast %36 : vector<64x1xf32> to vector<64x91xf32>
    %64 = arith.mulf %58, %63 : vector<64x91xf32>
    %65 = arith.addf %62, %64 : vector<64x91xf32>
    %66 = vector.broadcast %45 : vector<64x1xf32> to vector<64x91xf32>
    %67 = arith.mulf %60, %66 : vector<64x91xf32>
    %68 = arith.addf %65, %67 : vector<64x91xf32>
    %69 = vector.broadcast %52 : vector<64x1xf32> to vector<64x91xf32>
    %70 = arith.addf %68, %69 : vector<64x91xf32>
    %c0_20 = arith.constant 0 : index
    %c0_21 = arith.constant 0 : index
    %c0_22 = arith.constant 0 : index
    %71 = vector.load %arg3[%c0_20, %c0_21, %c0_22] : memref<3x64x91xf32, #tpu.memory_space<vmem>>, vector<1x64x91xf32>
    %72 = vector.shape_cast %71 : vector<1x64x91xf32> to vector<64x91xf32>
    %73 = vector.shape_cast %70 : vector<64x91xf32> to vector<1x64x91xf32>
    tpu.vector_store %arg3[%c0_20, %c0_21, %c0_22], %73 {strides = array<i32>} : memref<3x64x91xf32, #tpu.memory_space<vmem>>, vector<1x64x91xf32>,
    %74 = vector.broadcast %30 : vector<64x1xf32> to vector<64x91xf32>
    %75 = arith.mulf %56, %74 : vector<64x91xf32>
    %76 = vector.broadcast %39 : vector<64x1xf32> to vector<64x91xf32>
    %77 = arith.mulf %58, %76 : vector<64x91xf32>
    %78 = arith.addf %75, %77 : vector<64x91xf32>
    %79 = vector.broadcast %48 : vector<64x1xf32> to vector<64x91xf32>
    %80 = arith.mulf %60, %79 : vector<64x91xf32>
    %81 = arith.addf %78, %80 : vector<64x91xf32>
    %82 = vector.broadcast %53 : vector<64x1xf32> to vector<64x91xf32>
    %83 = arith.addf %81, %82 : vector<64x91xf32>
    %c1_23 = arith.constant 1 : index
    %c0_24 = arith.constant 0 : index
    %c0_25 = arith.constant 0 : index
    %84 = vector.load %arg3[%c1_23, %c0_24, %c0_25] : memref<3x64x91xf32, #tpu.memory_space<vmem>>, vector<1x64x91xf32>
    %85 = vector.shape_cast %84 : vector<1x64x91xf32> to vector<64x91xf32>
    %86 = vector.shape_cast %83 : vector<64x91xf32> to vector<1x64x91xf32>
    tpu.vector_store %arg3[%c1_23, %c0_24, %c0_25], %86 {strides = array<i32>} : memref<3x64x91xf32, #tpu.memory_space<vmem>>, vector<1x64x91xf32>,
    %87 = vector.broadcast %33 : vector<64x1xf32> to vector<64x91xf32>
    %88 = arith.mulf %56, %87 : vector<64x91xf32>
    %89 = vector.broadcast %42 : vector<64x1xf32> to vector<64x91xf32>
    %90 = arith.mulf %58, %89 : vector<64x91xf32>
    %91 = arith.addf %88, %90 : vector<64x91xf32>
    %92 = vector.broadcast %51 : vector<64x1xf32> to vector<64x91xf32>
    %93 = arith.mulf %60, %92 : vector<64x91xf32>
    %94 = arith.addf %91, %93 : vector<64x91xf32>
    %95 = vector.broadcast %54 : vector<64x1xf32> to vector<64x91xf32>
    %96 = arith.addf %94, %95 : vector<64x91xf32>
    %c2_26 = arith.constant 2 : index
    %c0_27 = arith.constant 0 : index
    %c0_28 = arith.constant 0 : index
    %97 = vector.load %arg3[%c2_26, %c0_27, %c0_28] : memref<3x64x91xf32, #tpu.memory_space<vmem>>, vector<1x64x91xf32>
    %98 = vector.shape_cast %97 : vector<1x64x91xf32> to vector<64x91xf32>
    %99 = vector.shape_cast %96 : vector<64x91xf32> to vector<1x64x91xf32>
    tpu.vector_store %arg3[%c2_26, %c0_27, %c0_28], %99 {strides = array<i32>} : memref<3x64x91xf32, #tpu.memory_space<vmem>>, vector<1x64x91xf32>,
    return
  }
}

</mosaic_0001>

<bundles_post_ra>
// kernel: align_forward.1
= control target key start
LH: loop header
LB: loop body
LE: loop exit
PB: predicated region body
PF: predicated region fallthrough
CT: control target
= control target key end

     0   :  { %8 = vsyncpa [#allocation3], 0  ;;  %s2615_s0 = inlined_call_operand.vmem [shape: f32[64,3], index: 0, kind: input, shape index: {}]   ;;  %s2616_s1 = inlined_call_operand.vmem [shape: f32[64,3], index: 1, kind: input, shape index: {}]   ;;  %s2617_s2 = inlined_call_operand.hbm [shape: f32[3,64,91], index: 2, kind: input, shape index: {}]   ;;  %s2618_s3 = inlined_call_operand.hbm [shape: f32[3,64,91], index: 3, kind: output, shape index: {}]  }
   0x1   :  { %9 = vsyncpa [#allocation4], 0  ;;  %s1417_s12 = smov [#allocation2]   ;;  %s1369_s16 = scalar_lea.hbm %s2617_s2, 3072 }
   0x2   :  { %s19_s13 = sshll.u32 %s1417_s12, 4  ;;  %p1370_p0 = scmp.ne.s32.totalorder %s2617_s2, %s1369_s16  ;;  %s20_s13 = int_to_ptr.vmem [resolvable:$true] %s19_s13 }
   0x3   :  { %p1373_p1 = scmp.lt.u32.totalorder %s1369_s16, %s2617_s2 }
   0x5   :  { %p1375_p2 = pnand %p1373_p1, %p1370_p0 }
   0x7   :  { %1378 = shalt.err (!%p1375_p2)
}
   0x8   :  { %s1379_s21 = scalar_lea.vmem %s20_s13, 3072  ;;  %p1384_p4 = scmp.lt.s32.totalorder %s20_s13, %s20_s13 }
   0x9   :  { %p1380_p3 = scmp.ne.s32.totalorder %s20_s13, %s1379_s21  ;;  %p1385_p5 = scmp.lt.s32.totalorder %s1379_s21, %s1379_s21 }
   0xb   :  { %p1386_p6 = por %p1385_p5, %p1384_p4 }
   0xd   :  { %p1387_p7 = pnand %p1386_p6, %p1380_p3 }
   0xf   :  { %1390 = shalt.err (!%p1387_p7)
}
  0x10   :  { %s1418_s22 = smov 128   ;;  %s1419_s23 = smov 8  }
  0x11   :  { %25 = dma.hbm_to_vmem [thread:$0]  %s2617_s2, 3072, %s20_s13, [#allocation3], %s1418_s22, %s1418_s22, %s1419_s23  }
  0x12   :  { %1413 = dma.done.wait [#allocation3], 3072  }
  0x13   :  { %1414 = vsyncadd [#allocation3], 4294964224  ;;  %v2621_v0 = vmov 0   ;;  %v2623_v1 = vmov 1   ;;  %v1468_v2 = vld [vmem:[%s2615_s0 + $0x10] sm:$0xff]  ;;  %v1473_v3 = vld [vmem:[%s2615_s0] sm:$0xff] }
  0x14   :  { %1334 = vset.pattern.permute.xlu1 %v2621_v0  ;;  %1335 = vset.pattern.permute.xlu0 %v2623_v1  ;;  %v1478_v4 = vld [vmem:[%s2615_s0 + $0x18] sm:$0xff]  ;;  %v1482_v5 = vmul.f32 %v1468_v2, %v1468_v2  ;;  %v1486_v6 = vmul.f32 %v1473_v3, %v1473_v3  ;;  %v1491_v7 = vld [vmem:[%s2615_s0 + $0x8] sm:$0xff]  ;;  %s1422_s6 = smov 127   ;;  %v1513_v11 = vld [vmem:[%s2615_s0 + $0x20] sm:$0xff]  ;;  %v2619_v23 = vmov 2   ;;  %s1425_s5 = smov 1  }
  0x15   :  { %v1499_v8 = vmul.f32 %v1478_v4, %v1478_v4  ;;  %v1503_v9 = vmul.f32 %v1491_v7, %v1491_v7  ;;  %v1508_v10 = vld [vmem:[%s2615_s0 + $0x28] sm:$0xff]  ;;  %v1525_v13 = vmul.f32 %v1513_v11, %v1513_v11  ;;  %v1530_v14 = vld [vmem:[%s2615_s0 + $0x38] sm:$0xff]  ;;  %v1535_v15 = vld [vmem:[%s2615_s0 + $0x30] sm:$0xff]  ;;  %s1423_s0 = smov 126   ;;  %s1426_s7 = smov 2   ;;  %vm879_vm0 = vcmask 744448  }
  0x16   :  { %65 = vrot.lane.b32.xlu1 %v1482_v5, %s1422_s6  ;;  %61 = vrot.lane.b32.xlu0 %v1486_v6, %s1422_s6  ;;  %v1521_v12 = vmul.f32 %v1508_v10, %v1508_v10  ;;  %v1543_v16 = vmul.f32 %v1530_v14, %v1530_v14  ;;  %v1547_v17 = vmul.f32 %v1535_v15, %v1535_v15  ;;  %v637_v18 = vld [vmem:[%s2616_s1] sm:$0xff]  ;;  %v639_v19 = vld [vmem:[%s2616_s1 + $0x10] sm:$0xff]  ;;  %v45_v33 = vadd.f32 1.0, %v1486_v6 }
  0x17   :  { %v641_v20 = vld [vmem:[%s2616_s1 + $0x20] sm:$0xff]  ;;  %v643_v21 = vld [vmem:[%s2616_s1 + $0x30] sm:$0xff]  ;;  %v638_v22 = vld [vmem:[%s2616_s1 + $0x8] sm:$0xff]  ;;  %v46_v34 = vadd.f32 1.0, %v1503_v9  ;;  %v47_v37 = vadd.f32 1.0, %v1482_v5  ;;  %v48_v39 = vadd.f32 1.0, %v1499_v8 }
  0x18   :  { %v640_v24 = vld [vmem:[%s2616_s1 + $0x18] sm:$0xff]  ;;  %v642_v25 = vld [vmem:[%s2616_s1 + $0x28] sm:$0xff]  ;;  %v50_v45 = vadd.f32 1.0, %v1521_v12  ;;  %v49_v48 = vadd.f32 1.0, %v1525_v13  ;;  %v52_v53 = vadd.f32 1.0, %v1543_v16  ;;  %v51_v56 = vadd.f32 1.0, %v1547_v17 }
  0x19   :  { %v644_v26 = vld [vmem:[%s2616_s1 + $0x38] sm:$0xff] }
  0x1a   :  { %67 = vrot.lane.b32.xlu1 %v1499_v8, %s1422_s6  ;;  %63 = vrot.lane.b32.xlu0 %v1503_v9, %s1422_s6 }
  0x1e   :  { %71 = vrot.lane.b32.xlu1 %v1521_v12, %s1422_s6  ;;  %69 = vrot.lane.b32.xlu0 %v1525_v13, %s1422_s6 }
  0x22   :  { %75 = vrot.lane.b32.xlu1 %v1543_v16, %s1422_s6  ;;  %73 = vrot.lane.b32.xlu0 %v1547_v17, %s1422_s6 }
  0x26   :  { %95 = vrot.lane.b32.xlu1 %v1503_v9, %s1423_s0  ;;  %93 = vrot.lane.b32.xlu0 %v1486_v6, %s1423_s0 }
  0x2a   :  { %99 = vrot.lane.b32.xlu1 %v1499_v8, %s1423_s0  ;;  %97 = vrot.lane.b32.xlu0 %v1482_v5, %s1423_s0 }
  0x2e   :  { %103 = vrot.lane.b32.xlu1 %v1521_v12, %s1423_s0  ;;  %101 = vrot.lane.b32.xlu0 %v1525_v13, %s1423_s0 }
  0x32   :  { %107 = vrot.lane.b32.xlu1 %v1543_v16, %s1423_s0  ;;  %105 = vrot.lane.b32.xlu0 %v1547_v17, %s1423_s0 }
  0x36   :  { %833 = vperm.xlu1 %1334, %v637_v18   ;;  %1049 = vperm.xlu0 %1335, %v637_v18  }
  0x3a   :  { %843 = vperm.xlu1 %1334, %v639_v19   ;;  %1057 = vperm.xlu0 %1335, %v639_v19  }
  0x3e   :  { %853 = vperm.xlu1 %1334, %v641_v20   ;;  %1065 = vperm.xlu0 %1335, %v641_v20  }
  0x42   :  { %863 = vperm.xlu1 %1334, %v643_v21   ;;  %1073 = vperm.xlu0 %1335, %v643_v21  }
  0x46   :  { %1336 = vset.pattern.permute.xlu1 %v2623_v1  ;;  %1338 = vset.pattern.permute.xlu0 %v2619_v23 }
  0x47   :  { %1053 = vperm.xlu1 %1336, %v638_v22   ;;  %1262 = vperm.xlu0 %1338, %v638_v22  }
  0x4b   :  { %1061 = vperm.xlu1 %1336, %v640_v24   ;;  %1274 = vperm.xlu0 %1338, %v641_v20  }
  0x4f   :  { %1069 = vperm.xlu1 %1336, %v642_v25   ;;  %1339 = vset.pattern.permute.xlu0 %v2621_v0 }
  0x50   :  { %838 = vperm.xlu0 %1339, %v638_v22  }
  0x53   :  { %1077 = vperm.xlu1 %1336, %v644_v26  }
  0x54   :  { %848 = vperm.xlu0 %1339, %v640_v24  }
  0x57   :  { %1337 = vset.pattern.permute.xlu1 %v2619_v23 }
  0x58   :  { %1258 = vperm.xlu1 %1337, %v637_v18   ;;  %858 = vperm.xlu0 %1339, %v642_v25  }
  0x5c   :  { %1266 = vperm.xlu1 %1337, %v639_v19   ;;  %868 = vperm.xlu0 %1339, %v644_v26  }
  0x60   :  { %1270 = vperm.xlu1 %1337, %v640_v24  }
  0x64   :  { %1278 = vperm.xlu1 %1337, %v642_v25  }
  0x68   :  { %1340 = vset.pattern.permute.xlu1 %v2621_v0 }
  0x88   :  { %v66_v27 = vpop.permute.xlu1 %65  ;;  %v62_v28 = vpop.permute.xlu0 %61 }
  0x89   :  { %v85_v38 = vadd.f32 %v62_v28, %v45_v33  ;;  %v87_v46 = vadd.f32 %v66_v27, %v47_v37 }
  0x8c   :  { %v68_v29 = vpop.permute.xlu1 %67  ;;  %v64_v30 = vpop.permute.xlu0 %63 }
  0x8d   :  { %v86_v40 = vadd.f32 %v64_v30, %v46_v34  ;;  %v88_v47 = vadd.f32 %v68_v29, %v48_v39 }
  0x90   :  { %v72_v31 = vpop.permute.xlu1 %71  ;;  %v70_v32 = vpop.permute.xlu0 %69 }
  0x91   :  { %v90_v54 = vadd.f32 %v72_v31, %v50_v45  ;;  %v89_v55 = vadd.f32 %v70_v32, %v49_v48 }
  0x94   :  { %v76_v35 = vpop.permute.xlu1 %75  ;;  %v74_v36 = vpop.permute.xlu0 %73 }
  0x95   :  { %v92_v61 = vadd.f32 %v76_v35, %v52_v53  ;;  %v91_v62 = vadd.f32 %v74_v36, %v51_v56 }
  0x98   :  { %v96_v41 = vpop.permute.xlu1 %95  ;;  %v94_v42 = vpop.permute.xlu0 %93 }
  0x99   :  { %v118_v43 = vadd.f32 %v96_v41, %v86_v40  ;;  %v117_v44 = vadd.f32 %v94_v42, %v85_v38 }
  0x9b   :  { %1351 = vrsqrt.f32 %v118_v43 }
  0x9c   :  { %1353 = vrsqrt.f32 %v117_v44  ;;  %v100_v49 = vpop.permute.xlu1 %99  ;;  %v98_v50 = vpop.permute.xlu0 %97 }
  0x9d   :  { %v120_v51 = vadd.f32 %v100_v49, %v88_v47  ;;  %v119_v52 = vadd.f32 %v98_v50, %v87_v46 }
  0x9f   :  { %1355 = vrsqrt.f32 %v120_v51 }
  0xa0   :  { %1357 = vrsqrt.f32 %v119_v52  ;;  %v104_v57 = vpop.permute.xlu1 %103  ;;  %v102_v58 = vpop.permute.xlu0 %101 }
  0xa1   :  { %v122_v59 = vadd.f32 %v104_v57, %v90_v54  ;;  %v121_v60 = vadd.f32 %v102_v58, %v89_v55 }
  0xa3   :  { %1359 = vrsqrt.f32 %v122_v59 }
  0xa4   :  { %1361 = vrsqrt.f32 %v121_v60  ;;  %v108_v63 = vpop.permute.xlu1 %107  ;;  %v106_v5 = vpop.permute.xlu0 %105 }
  0xa5   :  { %v1606_v6 = vpop.eup %1351  ;;  %v124_v8 = vadd.f32 %v108_v63, %v92_v61  ;;  %v123_v9 = vadd.f32 %v106_v5, %v91_v62 }
  0xa6   :  { %v1608_v12 = vpop.eup %1353  ;;  %151 = vrot.lane.b32.xlu1 %v1606_v6, %s1425_s5  ;;  %v1614_v13 = vmul.f32 %v1606_v6, %v1491_v7  ;;  %v1624_v17 = vmul.f32 %v1606_v6, %v1606_v6 }
  0xa7   :  { %1363 = vrsqrt.f32 %v124_v8  ;;  %149 = vrot.lane.b32.xlu0 %v1608_v12, %s1425_s5  ;;  %v1620_v16 = vmul.f32 %v1608_v12, %v1473_v3  ;;  %v1634_v20 = vmul.f32 %v1608_v12, %v1608_v12 }
  0xa8   :  { %1365 = vrsqrt.f32 %v123_v9  ;;  %v1628_v18 = vmul.f32 %v1614_v13, %v1614_v13  ;;  %v246_v54 = vmul.f32 %v1606_v6, %v1614_v13 }
  0xa9   :  { %v1630_v19 = vpop.eup %1355  ;;  %v1638_v21 = vmul.f32 %v1620_v16, %v1620_v16  ;;  %v245_v55 = vmul.f32 %v1608_v12, %v1620_v16 }
  0xaa   :  { %v1640_v22 = vpop.eup %1357  ;;  %155 = vrot.lane.b32.xlu1 %v1630_v19, %s1425_s5  ;;  %v1646_v24 = vmul.f32 %v1630_v19, %v1478_v4  ;;  %v1650_v25 = vsub.f32 %v1624_v17, %v1628_v18  ;;  %v1664_v28 = vmul.f32 %v1630_v19, %v1630_v19 }
  0xab   :  { %153 = vrot.lane.b32.xlu0 %v1640_v22, %s1425_s5  ;;  %v1656_v26 = vmul.f32 %v1640_v22, %v1468_v2  ;;  %v1660_v27 = vsub.f32 %v1634_v20, %v1638_v21  ;;  %v1674_v31 = vmul.f32 %v1640_v22, %v1640_v22 }
  0xac   :  { %v1668_v29 = vmul.f32 %v1646_v24, %v1646_v24  ;;  %v248_v56 = vmul.f32 %v1630_v19, %v1646_v24 }
  0xad   :  { %v1670_v30 = vpop.eup %1359  ;;  %v1678_v32 = vmul.f32 %v1656_v26, %v1656_v26  ;;  %v247_v57 = vmul.f32 %v1640_v22, %v1656_v26 }
  0xae   :  { %v1680_v33 = vpop.eup %1361  ;;  %159 = vrot.lane.b32.xlu1 %v1670_v30, %s1425_s5  ;;  %v1686_v34 = vmul.f32 %v1670_v30, %v1508_v10  ;;  %v1690_v35 = vsub.f32 %v1664_v28, %v1668_v29  ;;  %v1704_v38 = vmul.f32 %v1670_v30, %v1670_v30 }
  0xaf   :  { %2668 = vst [vmem:[#allocation8_spill] sm:$0xff] %v1680_v33  ;;  %157 = vrot.lane.b32.xlu0 %v1680_v33, %s1425_s5  ;;  %v1696_v36 = vmul.f32 %v1680_v33, %v1513_v11  ;;  %v1700_v37 = vsub.f32 %v1674_v31, %v1678_v32  ;;  %v1714_v41 = vmul.f32 %v1680_v33, %v1680_v33 }
  0xb0   :  { %2669 = vst [vmem:[#allocation9_spill] sm:$0xff] %v1686_v34  ;;  %v1708_v39 = vmul.f32 %v1686_v34, %v1686_v34  ;;  %v250_v58 = vmul.f32 %v1670_v30, %v1686_v34  ;;  %v383_v34 = vadd.f32 %v1678_v32, %v1674_v31 }
  0xb1   :  { %2670 = vst [vmem:[#allocation10_spill] sm:$0xff] %v1696_v36  ;;  %v1710_v40 = vpop.eup %1363  ;;  %v1718_v42 = vmul.f32 %v1696_v36, %v1696_v36  ;;  %v249_v59 = vmul.f32 %v1680_v33, %v1696_v36 }
  0xb2   :  { %2671 = vst [vmem:[#allocation11_spill] sm:$0xff] %v1710_v40  ;;  %v1720_v43 = vpop.eup %1365  ;;  %163 = vrot.lane.b32.xlu1 %v1710_v40, %s1425_s5  ;;  %v1726_v44 = vmul.f32 %v1710_v40, %v1530_v14  ;;  %v1730_v45 = vsub.f32 %v1704_v38, %v1708_v39  ;;  %v1744_v48 = vmul.f32 %v1710_v40, %v1710_v40 }
  0xb3   :  { %2672 = vst [vmem:[#allocation12_spill] sm:$0xff] %v1720_v43  ;;  %161 = vrot.lane.b32.xlu0 %v1720_v43, %s1425_s5  ;;  %v1736_v46 = vmul.f32 %v1720_v43, %v1535_v15  ;;  %v1740_v47 = vsub.f32 %v1714_v41, %v1718_v42  ;;  %v1752_v50 = vmul.f32 %v1720_v43, %v1720_v43 }
  0xb4   :  { %2673 = vst [vmem:[#allocation13_spill] sm:$0xff] %v1726_v44  ;;  %v1748_v49 = vmul.f32 %v1726_v44, %v1726_v44  ;;  %v252_v60 = vmul.f32 %v1710_v40, %v1726_v44 }
  0xb5   :  { %2674 = vst [vmem:[#allocation14_spill] sm:$0xff] %v1736_v46  ;;  %v1756_v51 = vmul.f32 %v1736_v46, %v1736_v46  ;;  %v251_v61 = vmul.f32 %v1720_v43, %v1736_v46  ;;  %v1797_v62 = vpop.permute.xlu1 %833  ;;  %v1804_v8 = vpop.permute.xlu0 %1049 }
  0xb6   :  { %183 = vrot.lane.b32.xlu1 %v1606_v6, %s1426_s7  ;;  %v1761_v52 = vsub.f32 %v1744_v48, %v1748_v49  ;;  %2677 = vst [vmem:[#allocation17_spill] sm:$0xff] %v1797_v62  ;;  %2680 = vst [vmem:[#allocation20_spill] sm:$0xff] %v1804_v8 }
  0xb7   :  { %181 = vrot.lane.b32.xlu0 %v1608_v12, %s1426_s7  ;;  %v1766_v53 = vsub.f32 %v1752_v50, %v1756_v51 }
  0xb8   :  { %2675 = vst [vmem:[#allocation15_spill] sm:$0xff] %v1761_v52 }
  0xb9   :  { %2676 = vst [vmem:[#allocation16_spill] sm:$0xff] %v1766_v53  ;;  %v1800_v63 = vpop.permute.xlu1 %843 }
  0xba   :  { %187 = vrot.lane.b32.xlu1 %v1630_v19, %s1426_s7  ;;  %2678 = vst [vmem:[#allocation18_spill] sm:$0xff] %v1800_v63 }
  0xbb   :  { %185 = vrot.lane.b32.xlu0 %v1640_v22, %s1426_s7 }
  0xbd   :  { %v1802_v5 = vpop.permute.xlu1 %853 }
  0xbe   :  { %191 = vrot.lane.b32.xlu1 %v1670_v30, %s1426_s7  ;;  %2679 = vst [vmem:[#allocation19_spill] sm:$0xff] %v1802_v5 }
  0xbf   :  { %189 = vrot.lane.b32.xlu0 %v1680_v33, %s1426_s7 }
  0xc1   :  { %v1806_v9 = vpop.permute.xlu1 %863 }
  0xc2   :  { %195 = vrot.lane.b32.xlu1 %v1710_v40, %s1426_s7  ;;  %2681 = vst [vmem:[#allocation21_spill] sm:$0xff] %v1806_v9 }
  0xc3   :  { %193 = vrot.lane.b32.xlu0 %v1720_v43, %s1426_s7 }
  0xc6   :  { %551 = vrot.lane.b32.xlu1 %v246_v54, %s1425_s5  ;;  %v1808_v54 = vpop.permute.xlu0 %1057 }
  0xc7   :  { %549 = vrot.lane.b32.xlu0 %v245_v55, %s1425_s5  ;;  %2682 = vst [vmem:[#allocation22_spill] sm:$0xff] %v1808_v54  ;;  %v1810_v55 = vpop.permute.xlu1 %1053 }
  0xc8   :  { %2683 = vst [vmem:[#allocation23_spill] sm:$0xff] %v1810_v55 }
  0xca   :  { %555 = vrot.lane.b32.xlu1 %v248_v56, %s1425_s5  ;;  %v1812_v56 = vpop.permute.xlu0 %1065 }
  0xcb   :  { %553 = vrot.lane.b32.xlu0 %v247_v57, %s1425_s5  ;;  %2684 = vst [vmem:[#allocation24_spill] sm:$0xff] %v1812_v56  ;;  %v1814_v57 = vpop.permute.xlu1 %1061 }
  0xcc   :  { %2685 = vst [vmem:[#allocation25_spill] sm:$0xff] %v1814_v57 }
  0xce   :  { %559 = vrot.lane.b32.xlu1 %v250_v58, %s1425_s5  ;;  %v1816_v58 = vpop.permute.xlu0 %1073 }
  0xcf   :  { %557 = vrot.lane.b32.xlu0 %v249_v59, %s1425_s5  ;;  %2686 = vst [vmem:[#allocation26_spill] sm:$0xff] %v1816_v58  ;;  %v1818_v59 = vpop.permute.xlu1 %1069 }
  0xd0   :  { %2687 = vst [vmem:[#allocation27_spill] sm:$0xff] %v1818_v59 }
  0xd2   :  { %563 = vrot.lane.b32.xlu1 %v252_v60, %s1425_s5  ;;  %v1820_v60 = vpop.permute.xlu0 %1262 }
  0xd3   :  { %561 = vrot.lane.b32.xlu0 %v251_v61, %s1425_s5  ;;  %2688 = vst [vmem:[#allocation28_spill] sm:$0xff] %v1820_v60  ;;  %v1822_v61 = vpop.permute.xlu1 %1077 }
  0xd4   :  { %2689 = vst [vmem:[#allocation29_spill] sm:$0xff] %v1822_v61 }
  0xd6   :  { %v1824_v23 = vpop.permute.xlu0 %1274 }
  0xd7   :  { %2690 = vst [vmem:[#allocation30_spill] sm:$0xff] %v1824_v23  ;;  %v1826_v0 = vpop.permute.xlu1 %1258 }
  0xd8   :  { %2691 = vst [vmem:[#allocation31_spill] sm:$0xff] %v1826_v0 }
  0xda   :  { %v1828_v1 = vpop.permute.xlu0 %838 }
  0xdb   :  { %2692 = vst [vmem:[#allocation32_spill] sm:$0xff] %v1828_v1  ;;  %v1830_v54 = vpop.permute.xlu1 %1266 }
  0xdc   :  { %2693 = vst [vmem:[#allocation33_spill] sm:$0xff] %v1830_v54 }
  0xde   :  { %v1832_v55 = vpop.permute.xlu0 %848 }
  0xdf   :  { %2694 = vst [vmem:[#allocation34_spill] sm:$0xff] %v1832_v55  ;;  %v1834_v56 = vpop.permute.xlu1 %1270 }
  0xe0   :  { %2695 = vst [vmem:[#allocation35_spill] sm:$0xff] %v1834_v56 }
  0xe2   :  { %v1836_v57 = vpop.permute.xlu0 %858 }
  0xe3   :  { %2696 = vst [vmem:[#allocation36_spill] sm:$0xff] %v1836_v57  ;;  %v1838_v58 = vpop.permute.xlu1 %1278 }
  0xe4   :  { %2697 = vst [vmem:[#allocation37_spill] sm:$0xff] %v1838_v58 }
  0xe6   :  { %v1840_v59 = vpop.permute.xlu0 %868 }
  0xe7   :  { %2698 = vst [vmem:[#allocation38_spill] sm:$0xff] %v1840_v59 }
 0x118   :  { %v152_v60 = vpop.permute.xlu1 %151 }
 0x119   :  { %v1843_v61 = vmul.f32 %v152_v60, %v1491_v7  ;;  %v150_v23 = vpop.permute.xlu0 %149 }
 0x11a   :  { %v1846_v0 = vmul.f32 %v150_v23, %v1473_v3 }
 0x11b   :  { %2699 = vst [vmem:[#allocation39_spill] sm:$0xff] %v1843_v61  ;;  %263 = vrot.lane.b32.xlu1 %v1843_v61, %s1422_s6 }
 0x11c   :  { %2700 = vst [vmem:[#allocation40_spill] sm:$0xff] %v1846_v0  ;;  %261 = vrot.lane.b32.xlu0 %v1846_v0, %s1422_s6  ;;  %v156_v54 = vpop.permute.xlu1 %155 }
 0x11d   :  { %v1853_v56 = vmul.f32 %v156_v54, %v1478_v4  ;;  %v154_v58 = vpop.permute.xlu0 %153 }
 0x11e   :  { %v1856_v8 = vmul.f32 %v154_v58, %v1468_v2 }
 0x11f   :  { %2701 = vst [vmem:[#allocation41_spill] sm:$0xff] %v1853_v56  ;;  %267 = vrot.lane.b32.xlu1 %v1853_v56, %s1422_s6 }
 0x120   :  { %2702 = vst [vmem:[#allocation42_spill] sm:$0xff] %v1856_v8  ;;  %265 = vrot.lane.b32.xlu0 %v1856_v8, %s1422_s6  ;;  %v160_v23 = vpop.permute.xlu1 %159 }
 0x121   :  { %v1863_v60 = vmul.f32 %v160_v23, %v1508_v10  ;;  %v158_v59 = vpop.permute.xlu0 %157 }
 0x122   :  { %v1866_v9 = vmul.f32 %v158_v59, %v1513_v11 }
 0x123   :  { %2703 = vst [vmem:[#allocation43_spill] sm:$0xff] %v1863_v60  ;;  %271 = vrot.lane.b32.xlu1 %v1863_v60, %s1422_s6 }
 0x124   :  { %2704 = vst [vmem:[#allocation44_spill] sm:$0xff] %v1866_v9  ;;  %269 = vrot.lane.b32.xlu0 %v1866_v9, %s1422_s6  ;;  %v164_v54 = vpop.permute.xlu1 %163 }
 0x125   :  { %v1873_v58 = vmul.f32 %v164_v54, %v1530_v14  ;;  %v162_v57 = vpop.permute.xlu0 %161 }
 0x126   :  { %v1876_v5 = vmul.f32 %v162_v57, %v1535_v15 }
 0x127   :  { %2705 = vst [vmem:[#allocation45_spill] sm:$0xff] %v1873_v58  ;;  %275 = vrot.lane.b32.xlu1 %v1873_v58, %s1422_s6 }
 0x128   :  { %2706 = vst [vmem:[#allocation46_spill] sm:$0xff] %v1876_v5  ;;  %273 = vrot.lane.b32.xlu0 %v1876_v5, %s1422_s6  ;;  %v184_v59 = vpop.permute.xlu1 %183 }
 0x129   :  { %v206_v23 = vmul.f32 %v184_v59, %v1491_v7  ;;  %v182_v55 = vpop.permute.xlu0 %181 }
 0x12a   :  { %v205_v63 = vmul.f32 %v182_v55, %v1473_v3 }
 0x12b   :  { %303 = vrot.lane.b32.xlu1 %v206_v23, %s1423_s0 }
 0x12c   :  { %301 = vrot.lane.b32.xlu0 %v205_v63, %s1423_s0  ;;  %v188_v54 = vpop.permute.xlu1 %187 }
 0x12d   :  { %v208_v57 = vmul.f32 %v188_v54, %v1478_v4  ;;  %v186_v1 = vpop.permute.xlu0 %185 }
 0x12e   :  { %v207_v62 = vmul.f32 %v186_v1, %v1468_v2  ;;  %v230_v2 = vmul.f32 %v1843_v61, %v1843_v61 }
 0x12f   :  { %307 = vrot.lane.b32.xlu1 %v208_v57, %s1423_s0 }
 0x130   :  { %305 = vrot.lane.b32.xlu0 %v207_v62, %s1423_s0  ;;  %v192_v44 = vpop.permute.xlu1 %191 }
 0x131   :  { %v210_v7 = vmul.f32 %v192_v44, %v1508_v10  ;;  %v190_v59 = vpop.permute.xlu0 %189  ;;  %v229_v10 = vmul.f32 %v1846_v0, %v1846_v0  ;;  %v233_v44 = vmul.f32 %v1866_v9, %v1866_v9 }
 0x132   :  { %v209_v3 = vmul.f32 %v190_v59, %v1513_v11  ;;  %v232_v11 = vmul.f32 %v1853_v56, %v1853_v56  ;;  %v236_v59 = vmul.f32 %v1873_v58, %v1873_v58 }
 0x133   :  { %311 = vrot.lane.b32.xlu1 %v210_v7, %s1423_s0 }
 0x134   :  { %309 = vrot.lane.b32.xlu0 %v209_v3, %s1423_s0  ;;  %v196_v55 = vpop.permute.xlu1 %195 }
 0x135   :  { %v212_v4 = vmul.f32 %v196_v55, %v1530_v14  ;;  %v194_v54 = vpop.permute.xlu0 %193  ;;  %v231_v14 = vmul.f32 %v1856_v8, %v1856_v8  ;;  %v235_v55 = vmul.f32 %v1876_v5, %v1876_v5 }
 0x136   :  { %v211_v1 = vmul.f32 %v194_v54, %v1535_v15  ;;  %v234_v15 = vmul.f32 %v1863_v60, %v1863_v60  ;;  %v238_v54 = vmul.f32 %v206_v23, %v206_v23 }
 0x137   :  { %315 = vrot.lane.b32.xlu1 %v212_v4, %s1423_s0 }
 0x138   :  { %313 = vrot.lane.b32.xlu0 %v211_v1, %s1423_s0 }
 0x13b   :  { %351 = vrot.lane.b32.xlu1 %v206_v23, %s1422_s6  ;;  %v1940_v23 = vpop.permute.xlu0 %549 }
 0x13c   :  { %349 = vrot.lane.b32.xlu0 %v205_v63, %s1422_s6  ;;  %2708 = vst [vmem:[#allocation48_spill] sm:$0xff] %v1940_v23 }
 0x13f   :  { %355 = vrot.lane.b32.xlu1 %v208_v57, %s1422_s6 }
 0x140   :  { %353 = vrot.lane.b32.xlu0 %v207_v62, %s1422_s6 }
 0x143   :  { %359 = vrot.lane.b32.xlu1 %v210_v7, %s1422_s6 }
 0x144   :  { %357 = vrot.lane.b32.xlu0 %v209_v3, %s1422_s6 }
 0x147   :  { %363 = vrot.lane.b32.xlu1 %v212_v4, %s1422_s6 }
 0x148   :  { %361 = vrot.lane.b32.xlu0 %v211_v1, %s1422_s6 }
 0x14b   :  { %399 = vrot.lane.b32.xlu1 %v230_v2, %s1422_s6  ;;  %v237_v2 = vmul.f32 %v205_v63, %v205_v63  ;;  %v1938_v63 = vpop.permute.xlu1 %551 }
 0x14c   :  { %397 = vrot.lane.b32.xlu0 %v229_v10, %s1422_s6  ;;  %v240_v10 = vmul.f32 %v208_v57, %v208_v57  ;;  %2707 = vst [vmem:[#allocation47_spill] sm:$0xff] %v1938_v63  ;;  %v1944_v57 = vpop.permute.xlu0 %553 }
 0x14d   :  { %2710 = vst [vmem:[#allocation50_spill] sm:$0xff] %v1944_v57 }
 0x14f   :  { %403 = vrot.lane.b32.xlu1 %v232_v11, %s1422_s6  ;;  %v239_v11 = vmul.f32 %v207_v62, %v207_v62  ;;  %v1942_v62 = vpop.permute.xlu1 %555 }
 0x150   :  { %401 = vrot.lane.b32.xlu0 %v231_v14, %s1422_s6  ;;  %v242_v14 = vmul.f32 %v210_v7, %v210_v7  ;;  %2709 = vst [vmem:[#allocation49_spill] sm:$0xff] %v1942_v62 }
 0x153   :  { %407 = vrot.lane.b32.xlu1 %v234_v15, %s1422_s6  ;;  %v241_v15 = vmul.f32 %v209_v3, %v209_v3  ;;  %v1946_v7 = vpop.permute.xlu1 %559  ;;  %v1948_v3 = vpop.permute.xlu0 %557 }
 0x154   :  { %405 = vrot.lane.b32.xlu0 %v233_v44, %s1422_s6  ;;  %v244_v44 = vmul.f32 %v212_v4, %v212_v4  ;;  %2711 = vst [vmem:[#allocation51_spill] sm:$0xff] %v1946_v7  ;;  %2712 = vst [vmem:[#allocation52_spill] sm:$0xff] %v1948_v3 }
 0x157   :  { %411 = vrot.lane.b32.xlu1 %v236_v59, %s1422_s6  ;;  %v243_v59 = vmul.f32 %v211_v1, %v211_v1  ;;  %v1952_v4 = vpop.permute.xlu0 %561 }
 0x158   :  { %409 = vrot.lane.b32.xlu0 %v235_v55, %s1422_s6  ;;  %v1950_v55 = vpop.permute.xlu1 %563  ;;  %2714 = vst [vmem:[#allocation54_spill] sm:$0xff] %v1952_v4 }
 0x159   :  { %2713 = vst [vmem:[#allocation53_spill] sm:$0xff] %v1950_v55 }
 0x15b   :  { %439 = vrot.lane.b32.xlu1 %v238_v54, %s1423_s0 }
 0x15c   :  { %437 = vrot.lane.b32.xlu0 %v237_v2, %s1423_s0 }
 0x15f   :  { %443 = vrot.lane.b32.xlu1 %v240_v10, %s1423_s0 }
 0x160   :  { %441 = vrot.lane.b32.xlu0 %v239_v11, %s1423_s0 }
 0x163   :  { %447 = vrot.lane.b32.xlu1 %v242_v14, %s1423_s0 }
 0x164   :  { %445 = vrot.lane.b32.xlu0 %v241_v15, %s1423_s0 }
 0x167   :  { %451 = vrot.lane.b32.xlu1 %v244_v44, %s1423_s0 }
 0x168   :  { %449 = vrot.lane.b32.xlu0 %v243_v59, %s1423_s0 }
 0x18d   :  { %v1954_v1 = vpop.permute.xlu1 %263 }
 0x18e   :  { %v1956_v54 = vpop.permute.xlu0 %261  ;;  %v1974_v55 = vmul.f32 %v1606_v6, %v1954_v1 }
 0x190   :  { %2719 = vst [vmem:[#allocation59_spill] sm:$0xff] %v1974_v55 }
 0x191   :  { %v1958_v2 = vpop.permute.xlu1 %267 }
 0x192   :  { %v1960_v10 = vpop.permute.xlu0 %265 }
 0x193   :  { %v1996_v3 = vmul.f32 %v1640_v22, %v1960_v10 }
 0x195   :  { %v1962_v11 = vpop.permute.xlu1 %271  ;;  %2723 = vst [vmem:[#allocation63_spill] sm:$0xff] %v1996_v3 }
 0x196   :  { %2715 = vst [vmem:[#allocation55_spill] sm:$0xff] %v1962_v11  ;;  %v1964_v14 = vpop.permute.xlu0 %269 }
 0x197   :  { %2716 = vst [vmem:[#allocation56_spill] sm:$0xff] %v1964_v14  ;;  %v2016_v8 = vmul.f32 %v1680_v33, %v1964_v14 }
 0x199   :  { %v1966_v15 = vpop.permute.xlu1 %275  ;;  %2728 = vst [vmem:[#allocation68_spill] sm:$0xff] %v2016_v8 }
 0x19a   :  { %2717 = vst [vmem:[#allocation57_spill] sm:$0xff] %v1966_v15  ;;  %v1968_v44 = vpop.permute.xlu0 %273 }
 0x19b   :  { %2718 = vst [vmem:[#allocation58_spill] sm:$0xff] %v1968_v44 }
 0x19d   :  { %v1970_v59 = vpop.permute.xlu1 %303 }
 0x19e   :  { %v1978_v58 = vmul.f32 %v1970_v59, %v1614_v13  ;;  %v1980_v7 = vpop.permute.xlu0 %301 }
 0x1a0   :  { %2720 = vst [vmem:[#allocation60_spill] sm:$0xff] %v1978_v58  ;;  %v1984_v4 = vadd.f32 %v1978_v58, %v1974_v55 }
 0x1a1   :  { %v1986_v60 = vpop.permute.xlu1 %307 }
 0x1a2   :  { %2721 = vst [vmem:[#allocation61_spill] sm:$0xff] %v1984_v4  ;;  %v1988_v62 = vpop.permute.xlu0 %305 }
 0x1a3   :  { %v1992_v5 = vmul.f32 %v1988_v62, %v1656_v26 }
 0x1a5   :  { %2722 = vst [vmem:[#allocation62_spill] sm:$0xff] %v1992_v5  ;;  %v1998_v57 = vpop.permute.xlu1 %311  ;;  %v2004_v9 = vadd.f32 %v1992_v5, %v1996_v3  ;;  %v2032_v3 = vmul.f32 %v1720_v43, %v1968_v44 }
 0x1a6   :  { %v2000_v56 = vpop.permute.xlu0 %309 }
 0x1a7   :  { %2724 = vst [vmem:[#allocation64_spill] sm:$0xff] %v2004_v9  ;;  %v2010_v23 = vmul.f32 %v2000_v56, %v1696_v36  ;;  %2733 = vst [vmem:[#allocation73_spill] sm:$0xff] %v2032_v3 }
 0x1a9   :  { %v2006_v4 = vpop.permute.xlu1 %315  ;;  %2726 = vst [vmem:[#allocation66_spill] sm:$0xff] %v2010_v23  ;;  %v2020_v0 = vadd.f32 %v2010_v23, %v2016_v8 }
 0x1aa   :  { %2725 = vst [vmem:[#allocation65_spill] sm:$0xff] %v2006_v4  ;;  %v2012_v63 = vpop.permute.xlu0 %313 }
 0x1ab   :  { %2727 = vst [vmem:[#allocation67_spill] sm:$0xff] %v2012_v63  ;;  %2729 = vst [vmem:[#allocation69_spill] sm:$0xff] %v2020_v0  ;;  %v2024_v61 = vmul.f32 %v2012_v63, %v1736_v46 }
 0x1ad   :  { %2730 = vst [vmem:[#allocation70_spill] sm:$0xff] %v2024_v61  ;;  %v2026_v9 = vpop.permute.xlu1 %351  ;;  %v2036_v58 = vadd.f32 %v2024_v61, %v2032_v3 }
 0x1ae   :  { %2731 = vst [vmem:[#allocation71_spill] sm:$0xff] %v2026_v9  ;;  %v2028_v5 = vpop.permute.xlu0 %349 }
 0x1af   :  { %2732 = vst [vmem:[#allocation72_spill] sm:$0xff] %v2028_v5  ;;  %2734 = vst [vmem:[#allocation74_spill] sm:$0xff] %v2036_v58 }
 0x1b1   :  { %v2038_v55 = vpop.permute.xlu1 %355 }
 0x1b2   :  { %2735 = vst [vmem:[#allocation75_spill] sm:$0xff] %v2038_v55  ;;  %v2040_v23 = vpop.permute.xlu0 %353 }
 0x1b3   :  { %2736 = vst [vmem:[#allocation76_spill] sm:$0xff] %v2040_v23 }
 0x1b5   :  { %v2042_v0 = vpop.permute.xlu1 %359 }
 0x1b6   :  { %2737 = vst [vmem:[#allocation77_spill] sm:$0xff] %v2042_v0  ;;  %v2044_v8 = vpop.permute.xlu0 %357 }
 0x1b7   :  { %2738 = vst [vmem:[#allocation78_spill] sm:$0xff] %v2044_v8 }
 0x1b9   :  { %v2046_v46 = vpop.permute.xlu1 %363 }
 0x1ba   :  { %2739 = vst [vmem:[#allocation79_spill] sm:$0xff] %v2046_v46  ;;  %v2048_v9 = vpop.permute.xlu0 %361 }
 0x1bb   :  { %2740 = vst [vmem:[#allocation80_spill] sm:$0xff] %v2048_v9 }
 0x1bd   :  { %v400_v5 = vpop.permute.xlu1 %399 }
 0x1be   :  { %v398_v15 = vpop.permute.xlu0 %397  ;;  %v2051_v44 = vadd.f32 %v1650_v25, %v400_v5  ;;  %v622_v61 = vsub.f32 %v1650_v25, %v400_v5 }
 0x1bf   :  { %v2055_v58 = vadd.f32 %v1660_v27, %v398_v15  ;;  %v621_v55 = vsub.f32 %v1660_v27, %v398_v15 }
 0x1c1   :  { %v404_v23 = vpop.permute.xlu1 %403 }
 0x1c2   :  { %v2059_v0 = vadd.f32 %v1690_v35, %v404_v23  ;;  %v624_v46 = vsub.f32 %v1690_v35, %v404_v23  ;;  %v402_v8 = vpop.permute.xlu0 %401  ;;  %v382_v35 = vadd.f32 %v1628_v18, %v1624_v17 }
 0x1c3   :  { %v2063_v9 = vadd.f32 %v1700_v37, %v402_v8  ;;  %v623_v3 = vsub.f32 %v1700_v37, %v402_v8 }
 0x1c4   :  { %v422_v17 = vsub.f32 %v382_v35, %v400_v5  ;;  %v423_v35 = vsub.f32 %v383_v34, %v402_v8  ;;  %v2752_v8 = vld [vmem:[#allocation67_spill] sm:$0xff] }
 0x1c5   :  { %v408_v43 = vpop.permute.xlu1 %407 }
 0x1c6   :  { %v2067_v25 = vadd.f32 %v1730_v45, %v408_v43  ;;  %v626_v63 = vsub.f32 %v1730_v45, %v408_v43  ;;  %v406_v40 = vpop.permute.xlu0 %405  ;;  %v381_v45 = vadd.f32 %v1638_v21, %v1634_v20 }
 0x1c7   :  { %v2071_v27 = vadd.f32 %v1740_v47, %v406_v40  ;;  %v625_v4 = vsub.f32 %v1740_v47, %v406_v40 }
 0x1c8   :  { %v421_v18 = vsub.f32 %v381_v45, %v398_v15 }
 0x1c9   :  { %v2074_v14 = vpop.permute.xlu1 %411 }
 0x1ca   :  { %v2080_v37 = vadd.f32 %v1761_v52, %v2074_v14  ;;  %v2084_v11 = vpop.permute.xlu0 %409  ;;  %v2753_v52 = vld [vmem:[#allocation12_spill] sm:$0xff] }
 0x1cb   :  { %2742 = vst [vmem:[#allocation82_spill] sm:$0xff] %v2084_v11  ;;  %v2090_v47 = vadd.f32 %v1766_v53, %v2084_v11  ;;  %v2228_v15 = vmul.f32 %v2753_v52, %v2752_v8 }
 0x1cc   :  { %2741 = vst [vmem:[#allocation81_spill] sm:$0xff] %v2080_v37  ;;  %v384_v37 = vadd.f32 %v1668_v29, %v1664_v28 }
 0x1cd   :  { %v2094_v33 = vpop.permute.xlu1 %439 }
 0x1ce   :  { %v462_v36 = vsub.f32 %v422_v17, %v2094_v33  ;;  %v2102_v20 = vadd.f32 %v622_v61, %v2094_v33  ;;  %v2104_v21 = vpop.permute.xlu0 %437  ;;  %v424_v29 = vsub.f32 %v384_v37, %v404_v23  ;;  %v386_v61 = vadd.f32 %v1708_v39, %v1704_v38 }
 0x1cf   :  { %v461_v5 = vsub.f32 %v421_v18, %v2104_v21  ;;  %v2112_v28 = vadd.f32 %v621_v55, %v2104_v21  ;;  %v388_v55 = vadd.f32 %v1748_v49, %v1744_v48  ;;  %v2154_v49 = vmul.f32 %v1608_v12, %v1980_v7 }
 0x1d0   :  { %678 = vperm.xlu1 %1340, %v462_v36   ;;  %v385_v36 = vadd.f32 %v1718_v42, %v1714_v41  ;;  %v426_v39 = vsub.f32 %v386_v61, %v408_v43  ;;  %v2142_v41 = vmul.f32 %v1606_v6, %v1970_v59  ;;  %v2169_v59 = vmul.f32 %v1956_v54, %v1620_v16 }
 0x1d1   :  { %673 = vperm.xlu0 %1339, %v461_v5   ;;  %v2114_v45 = vpop.permute.xlu1 %443 }
 0x1d2   :  { %v464_v17 = vsub.f32 %v424_v29, %v2114_v45  ;;  %v2122_v32 = vadd.f32 %v624_v46, %v2114_v45  ;;  %v2124_v18 = vpop.permute.xlu0 %441  ;;  %v425_v23 = vsub.f32 %v385_v36, %v406_v40  ;;  %v387_v46 = vadd.f32 %v1756_v51, %v1752_v50 }
 0x1d3   :  { %v463_v34 = vsub.f32 %v423_v35, %v2124_v18  ;;  %v2132_v38 = vadd.f32 %v623_v3, %v2124_v18  ;;  %v428_v3 = vsub.f32 %v388_v55, %v2074_v14  ;;  %v2180_v35 = vmul.f32 %v1640_v22, %v1988_v62 }
 0x1d4   :  { %v427_v5 = vsub.f32 %v387_v46, %v2084_v11  ;;  %v2196_v22 = vmul.f32 %v1960_v10, %v1656_v26  ;;  %v2204_v46 = vmul.f32 %v1670_v30, %v1998_v57  ;;  %v2746_v26 = vld [vmem:[#allocation9_spill] sm:$0xff]  ;;  %v2747_v10 = vld [vmem:[#allocation55_spill] sm:$0xff]  ;;  %v2240_v11 = vmul.f32 %v1980_v7, %v1620_v16  ;;  %v2759_v7 = vld [vmem:[#allocation60_spill] sm:$0xff] }
 0x1d5   :  { %2743 = vst [vmem:[#allocation83_spill] sm:$0xff] %v2132_v38  ;;  %683 = vperm.xlu1 %1340, %v463_v34   ;;  %688 = vperm.xlu0 %1339, %v464_v17   ;;  %v2138_v37 = vpop.permute.xlu1 %447  ;;  %v501_v17 = vadd.f32 %v2169_v59, %v2154_v49  ;;  %v2192_v34 = vmul.f32 %v1958_v2, %v1646_v24  ;;  %v2758_v16 = vld [vmem:[#allocation59_spill] sm:$0xff] }
 0x1d6   :  { %v466_v42 = vsub.f32 %v426_v39, %v2138_v37  ;;  %v2148_v40 = vadd.f32 %v626_v63, %v2138_v37  ;;  %v2150_v48 = vpop.permute.xlu0 %445  ;;  %v2165_v63 = vmul.f32 %v1954_v1, %v1614_v13  ;;  %v503_v39 = vadd.f32 %v2196_v22, %v2180_v35 }
 0x1d7   :  { %v465_v50 = vsub.f32 %v425_v23, %v2150_v48  ;;  %v2160_v51 = vadd.f32 %v625_v4, %v2150_v48  ;;  %v2176_v4 = vmul.f32 %v1630_v19, %v1986_v60  ;;  %v509_v55 = vmul.f32 2.0, %v501_v17 }
 0x1d8   :  { %v502_v61 = vadd.f32 %v2165_v63, %v2142_v41  ;;  %v511_v17 = vmul.f32 2.0, %v503_v39  ;;  %v2757_v39 = vld [vmem:[#allocation58_spill] sm:$0xff]  ;;  %v2248_v38 = vmul.f32 %v1608_v12, %v1956_v54 }
 0x1d9   :  { %2744 = vst [vmem:[#allocation84_spill] sm:$0xff] %v2160_v51  ;;  %693 = vperm.xlu1 %1340, %v465_v50   ;;  %698 = vperm.xlu0 %1339, %v466_v42   ;;  %v2172_v29 = vpop.permute.xlu1 %451  ;;  %v504_v62 = vadd.f32 %v2192_v34, %v2176_v4  ;;  %v2745_v42 = vld [vmem:[#allocation8_spill] sm:$0xff]  ;;  %v2761_v54 = vld [vmem:[#allocation62_spill] sm:$0xff] }
 0x1da   :  { %v468_v13 = vsub.f32 %v428_v3, %v2172_v29  ;;  %v2183_v1 = vpop.permute.xlu0 %449  ;;  %v510_v23 = vmul.f32 2.0, %v502_v61  ;;  %v2208_v50 = vmul.f32 %v2745_v42, %v2000_v56  ;;  %v2212_v3 = vmul.f32 %v2747_v10, %v2746_v26  ;;  %v2750_v56 = vld [vmem:[#allocation65_spill] sm:$0xff]  ;;  %v2751_v42 = vld [vmem:[#allocation11_spill] sm:$0xff] }
 0x1db   :  { %v467_v36 = vsub.f32 %v427_v5, %v2183_v1  ;;  %v2748_v5 = vld [vmem:[#allocation10_spill] sm:$0xff]  ;;  %v512_v61 = vmul.f32 2.0, %v504_v62  ;;  %v2224_v31 = vmul.f32 %v2751_v42, %v2750_v56 }
 0x1dc   :  { %v506_v43 = vadd.f32 %v2212_v3, %v2204_v46  ;;  %v2756_v62 = vld [vmem:[#allocation14_spill] sm:$0xff] }
 0x1dd   :  { %703 = vperm.xlu1 %1340, %v467_v36   ;;  %708 = vperm.xlu0 %1339, %v468_v13   ;;  %v2749_v13 = vld [vmem:[#allocation56_spill] sm:$0xff] }
 0x1de   :  { %v2216_v36 = vmul.f32 %v2749_v13, %v2748_v5  ;;  %v2754_v5 = vld [vmem:[#allocation13_spill] sm:$0xff]  ;;  %v514_v53 = vmul.f32 2.0, %v506_v43  ;;  %v590_v43 = vsub.f32 %v2759_v7, %v2758_v16  ;;  %v2268_v16 = vmul.f32 %v1998_v57, %v2746_v26  ;;  %v2762_v7 = vld [vmem:[#allocation68_spill] sm:$0xff] }
 0x1df   :  { %v2755_v13 = vld [vmem:[#allocation57_spill] sm:$0xff] }
 0x1e0   :  { %v505_v6 = vadd.f32 %v2216_v36, %v2208_v50  ;;  %v2284_v57 = vmul.f32 %v2751_v42, %v2755_v13 }
 0x1e1   :  { %721 = vperm.xlu1 %1340, %v509_v55   ;;  %726 = vperm.xlu0 %1339, %v510_v23   ;;  %v2232_v55 = vmul.f32 %v2755_v13, %v2754_v5  ;;  %v2236_v23 = vmul.f32 %v2757_v39, %v2756_v62  ;;  %v2260_v39 = vmul.f32 %v1630_v19, %v1958_v2 }
 0x1e2   :  { %v513_v51 = vmul.f32 2.0, %v505_v6  ;;  %v589_v6 = vsub.f32 %v2240_v11, %v2248_v38 }
 0x1e3   :  { %v508_v52 = vadd.f32 %v2232_v55, %v2224_v31  ;;  %v507_v8 = vadd.f32 %v2236_v23, %v2228_v15 }
 0x1e5   :  { %731 = vperm.xlu1 %1340, %v511_v17   ;;  %736 = vperm.xlu0 %1339, %v512_v61   ;;  %v2252_v61 = vmul.f32 %v1986_v60, %v1646_v24  ;;  %v516_v17 = vmul.f32 2.0, %v508_v52  ;;  %v515_v62 = vmul.f32 2.0, %v507_v8  ;;  %v597_v24 = vmul.f32 2.0, %v589_v6  ;;  %v2760_v60 = vld [vmem:[#allocation63_spill] sm:$0xff] }
 0x1e6   :  { %v2272_v52 = vmul.f32 %v1670_v30, %v2747_v10 }
 0x1e7   :  { %v592_v12 = vsub.f32 %v2252_v61, %v2260_v39 }
 0x1e8   :  { %v594_v8 = vsub.f32 %v2268_v16, %v2272_v52 }
 0x1e9   :  { %741 = vperm.xlu1 %1340, %v513_v51   ;;  %746 = vperm.xlu0 %1339, %v514_v53   ;;  %v598_v53 = vmul.f32 2.0, %v590_v43  ;;  %v591_v51 = vsub.f32 %v2761_v54, %v2760_v60  ;;  %v600_v19 = vmul.f32 2.0, %v592_v12  ;;  %v2763_v43 = vld [vmem:[#allocation66_spill] sm:$0xff]  ;;  %v472_v54 = vsub.f32 %v2192_v34, %v2176_v4 }
 0x1ea   :  { %v593_v6 = vsub.f32 %v2763_v43, %v2762_v7  ;;  %v602_v30 = vmul.f32 2.0, %v594_v8  ;;  %v2765_v12 = vld [vmem:[#allocation70_spill] sm:$0xff]  ;;  %v476_v4 = vsub.f32 %v2232_v55, %v2224_v31  ;;  %v2768_v31 = vsub.f32 %v2063_v9, %v2124_v18  ;;  %v2773_v8 = vld [vmem:[#allocation72_spill] sm:$0xff]  ;;  %v2779_v43 = vld [vmem:[#allocation47_spill] sm:$0xff] }
 0x1eb   :  { %v599_v2 = vmul.f32 2.0, %v591_v51  ;;  %v471_v51 = vsub.f32 %v2196_v22, %v2180_v35  ;;  %v475_v35 = vsub.f32 %v2236_v23, %v2228_v15  ;;  %v2769_v15 = vsub.f32 %v2059_v0, %v2114_v45  ;;  %v2772_v23 = vld [vmem:[#allocation40_spill] sm:$0xff]  ;;  %v2776_v9 = vld [vmem:[#allocation42_spill] sm:$0xff]  ;;  %v2778_v0 = vld [vmem:[#allocation81_spill] sm:$0xff] }
 0x1ec   :  { %v601_v26 = vmul.f32 2.0, %v593_v6  ;;  %v484_v34 = vmul.f32 2.0, %v476_v4  ;;  %v2322_v7 = vmul.f32 %v2773_v8, %v2772_v23  ;;  %v540_v45 = vsub.f32 %v2778_v0, %v2172_v29  ;;  %v2793_v4 = vld [vmem:[#allocation54_spill] sm:$0xff]  ;;  %v2797_v8 = vld [vmem:[#allocation53_spill] sm:$0xff] }
 0x1ed   :  { %751 = vperm.xlu1 %1340, %v515_v62   ;;  %756 = vperm.xlu0 %1339, %v516_v17   ;;  %v2280_v17 = vmul.f32 %v2750_v56, %v2754_v5  ;;  %v2764_v62 = vld [vmem:[#allocation73_spill] sm:$0xff]  ;;  %v470_v56 = vsub.f32 %v2165_v63, %v2142_v41  ;;  %v469_v5 = vsub.f32 %v2169_v59, %v2154_v49  ;;  %v483_v22 = vmul.f32 2.0, %v475_v35 }
 0x1ee   :  { %v474_v41 = vsub.f32 %v2212_v3, %v2204_v46  ;;  %v473_v49 = vsub.f32 %v2216_v36, %v2208_v50  ;;  %v2766_v46 = vsub.f32 %v2055_v58, %v2104_v21  ;;  %v2767_v50 = vsub.f32 %v2051_v44, %v2094_v33  ;;  %v2770_v3 = vld [vmem:[#allocation39_spill] sm:$0xff]  ;;  %v2777_v44 = vld [vmem:[#allocation76_spill] sm:$0xff] }
 0x1ef   :  { %v596_v10 = vsub.f32 %v2280_v17, %v2284_v57  ;;  %v477_v60 = vmul.f32 2.0, %v469_v5  ;;  %v2771_v36 = vld [vmem:[#allocation71_spill] sm:$0xff]  ;;  %v2774_v58 = vsub.f32 %v2071_v27, %v2150_v48  ;;  %v2775_v33 = vsub.f32 %v2067_v25, %v2138_v37  ;;  %v2781_v48 = vld [vmem:[#allocation44_spill] sm:$0xff]  ;;  %v2783_v25 = vld [vmem:[#allocation41_spill] sm:$0xff] }
 0x1f0   :  { %v482_v63 = vmul.f32 2.0, %v474_v41  ;;  %v481_v59 = vmul.f32 2.0, %v473_v49  ;;  %v374_v55 = vmul.f32 %v2771_v36, %v2770_v3  ;;  %v2332_v21 = vmul.f32 %v2777_v44, %v2776_v9  ;;  %v2784_v37 = vld [vmem:[#allocation75_spill] sm:$0xff]  ;;  %v2792_v49 = vld [vmem:[#allocation77_spill] sm:$0xff] }
 0x1f1   :  { %777 = vperm.xlu1 %1340, %v597_v24   ;;  %782 = vperm.xlu0 %1339, %v598_v53   ;;  %v595_v53 = vsub.f32 %v2765_v12, %v2764_v62  ;;  %v604_v42 = vmul.f32 2.0, %v596_v10  ;;  %v478_v24 = vmul.f32 2.0, %v470_v56  ;;  %v539_v18 = vsub.f32 %v2090_v47, %v2183_v1  ;;  %v2785_v12 = vld [vmem:[#allocation50_spill] sm:$0xff]  ;;  %v2786_v47 = vld [vmem:[#allocation52_spill] sm:$0xff]  ;;  %v2791_v41 = vld [vmem:[#allocation43_spill] sm:$0xff] }
 0x1f2   :  { %v606_v6 = vadd.f32 %v2779_v43, %v374_v55  ;;  %v2345_v62 = vmul.f32 %v2784_v37, %v2783_v25  ;;  %v485_v36 = vadd.f32 %v2240_v11, %v2248_v38  ;;  %v488_v9 = vadd.f32 %v2252_v61, %v2260_v39  ;;  %v2799_v11 = vld [vmem:[#allocation61_spill] sm:$0xff]  ;;  %v2800_v61 = vld [vmem:[#allocation64_spill] sm:$0xff] }
 0x1f3   :  { %v603_v13 = vmul.f32 2.0, %v595_v53  ;;  %v607_v53 = vadd.f32 %v2785_v12, %v2332_v21  ;;  %v2798_v44 = vmov 0   ;;  %v494_v38 = vmul.f32 2.0, %v2799_v11  ;;  %v2446_v11 = vld [vmem:[#allocation2 + $0x88] sm:$0xff] }
 0x1f4   :  { %v614_v56 = vmul.f32 2.0, %v606_v6  ;;  %v495_v39 = vmul.f32 2.0, %v2800_v61  ;;  %v2452_v61 = vld [vmem:[#allocation2 + $0x18] sm:$0xff] }
 0x1f5   :  { %787 = vperm.xlu1 %1340, %v599_v2   ;;  %792 = vperm.xlu0 %1339, %v600_v19   ;;  %v480_v19 = vmul.f32 2.0, %v472_v54  ;;  %v479_v2 = vmul.f32 2.0, %v471_v51  ;;  %v2789_v54 = vmov 1   ;;  %v2790_v51 = vld [vmem:[#allocation49_spill] sm:$0xff] }
 0x1f9   :  { %797 = vperm.xlu1 %1340, %v601_v26   ;;  %802 = vperm.xlu0 %1339, %v602_v30   ;;  %v2780_v30 = vld [vmem:[#allocation48_spill] sm:$0xff]  ;;  %v2782_v26 = vld [vmem:[#allocation78_spill] sm:$0xff] }
 0x1fa   :  { %v605_v27 = vadd.f32 %v2780_v30, %v2322_v7  ;;  %v377_v10 = vmul.f32 %v2782_v26, %v2781_v48  ;;  %v574_v26 = vsub.f32 %v374_v55, %v2779_v43  ;;  %v575_v43 = vsub.f32 %v2332_v21, %v2785_v12 }
 0x1fc   :  { %v613_v5 = vmul.f32 2.0, %v605_v27  ;;  %v492_v27 = vadd.f32 %v2280_v17, %v2284_v57  ;;  %v582_v25 = vmul.f32 2.0, %v574_v26  ;;  %v577_v37 = vsub.f32 %v377_v10, %v2786_v47  ;;  %v2802_v17 = vld [vmem:[#allocation74_spill] sm:$0xff] }
 0x1fd   :  { %807 = vperm.xlu1 %1340, %v603_v13   ;;  %812 = vperm.xlu0 %1339, %v604_v42   ;;  %v609_v42 = vadd.f32 %v2786_v47, %v377_v10  ;;  %v2787_v13 = vld [vmem:[#allocation46_spill] sm:$0xff]  ;;  %v499_v57 = vmul.f32 2.0, %v2802_v17  ;;  %v576_v10 = vsub.f32 %v2345_v62, %v2790_v51  ;;  %v583_v47 = vmul.f32 2.0, %v575_v43  ;;  %v2458_v17 = vld [vmem:[#allocation2 + $0x68] sm:$0xff]  ;;  %v2466_v43 = vld [vmem:[#allocation2 + $0x98] sm:$0xff] }
 0x1fe   :  { %v500_v48 = vmul.f32 2.0, %v492_v27  ;;  %v2450_v27 = vld [vmem:[#allocation2 + $0x10] sm:$0xff] }
 0x201   :  { %890 = vperm.xlu1 %1340, %v477_v60   ;;  %895 = vperm.xlu0 %1339, %v478_v24   ;;  %v2788_v24 = vld [vmem:[#allocation80_spill] sm:$0xff] }
 0x202   :  { %v379_v60 = vmul.f32 %v2788_v24, %v2787_v13 }
 0x204   :  { %v611_v35 = vadd.f32 %v2793_v4, %v379_v60 }
 0x205   :  { %900 = vperm.xlu1 %1340, %v479_v2   ;;  %905 = vperm.xlu0 %1339, %v480_v19   ;;  %v608_v19 = vadd.f32 %v2790_v51, %v2345_v62  ;;  %v615_v2 = vmul.f32 2.0, %v607_v53  ;;  %v573_v53 = vsub.f32 %v2322_v7, %v2780_v30  ;;  %v584_v7 = vmul.f32 2.0, %v576_v10  ;;  %v2470_v10 = vld [vmem:[#allocation2 + $0x28] sm:$0xff] }
 0x206   :  { %v619_v3 = vmul.f32 2.0, %v611_v35 }
 0x207   :  { %v581_v55 = vmul.f32 2.0, %v573_v53 }
 0x209   :  { %910 = vperm.xlu1 %1340, %v481_v59   ;;  %915 = vperm.xlu0 %1339, %v482_v63   ;;  %v2358_v63 = vmul.f32 %v2792_v49, %v2791_v41  ;;  %v617_v59 = vmul.f32 2.0, %v609_v42 }
 0x20d   :  { %920 = vperm.xlu1 %1340, %v483_v22   ;;  %925 = vperm.xlu0 %1339, %v484_v34   ;;  %v616_v34 = vmul.f32 2.0, %v608_v19  ;;  %v2794_v22 = vld [vmem:[#allocation51_spill] sm:$0xff] }
 0x20e   :  { %v578_v30 = vsub.f32 %v2358_v63, %v2794_v22 }
 0x210   :  { %v586_v12 = vmul.f32 2.0, %v578_v30 }
 0x211   :  { %938 = vperm.xlu1 %1340, %v2766_v46   ;;  %943 = vperm.xlu0 %1339, %v2767_v50   ;;  %v610_v46 = vadd.f32 %v2794_v22, %v2358_v63  ;;  %v2795_v50 = vld [vmem:[#allocation45_spill] sm:$0xff]  ;;  %v2808_v22 = vld [vmem:[#allocation16_spill] sm:$0xff] }
 0x213   :  { %v618_v23 = vmul.f32 2.0, %v610_v46  ;;  %v2809_v46 = vld [vmem:[#allocation82_spill] sm:$0xff] }
 0x215   :  { %948 = vperm.xlu1 %1340, %v2768_v31   ;;  %953 = vperm.xlu0 %1339, %v2769_v15   ;;  %v2796_v31 = vld [vmem:[#allocation79_spill] sm:$0xff] }
 0x216   :  { %v2365_v15 = vmul.f32 %v2796_v31, %v2795_v50  ;;  %v2810_v50 = vsub.f32 %v2808_v22, %v2809_v46  ;;  %v2492_v22 = vld [vmem:[#allocation2 + $0x38] sm:$0xff] }
 0x218   :  { %v580_v24 = vsub.f32 %v2365_v15, %v2797_v8 }
 0x219   :  { %958 = vperm.xlu1 %1340, %v2774_v58   ;;  %963 = vperm.xlu0 %1339, %v2775_v33   ;;  %v612_v58 = vadd.f32 %v2797_v8, %v2365_v15  ;;  %v493_v33 = vmul.f32 2.0, %v485_v36  ;;  %v2428_v36 = vld [vmem:[#allocation2 + $0x48] sm:$0xff]  ;;  %v2432_v8 = vld [vmem:[#allocation2] sm:$0xff] }
 0x21b   :  { %v620_v0 = vmul.f32 2.0, %v612_v58 }
 0x21d   :  { %968 = vperm.xlu1 %1340, %v539_v18   ;;  %973 = vperm.xlu0 %1339, %v540_v45   ;;  %v496_v45 = vmul.f32 2.0, %v488_v9  ;;  %v490_v18 = vadd.f32 %v2268_v16, %v2272_v52  ;;  %v2801_v16 = vld [vmem:[#allocation69_spill] sm:$0xff] }
 0x21e   :  { %v497_v52 = vmul.f32 2.0, %v2801_v16 }
 0x21f   :  { %v498_v6 = vmul.f32 2.0, %v490_v18  ;;  %v2444_v18 = vld [vmem:[#allocation2 + $0x80] sm:$0xff] }
 0x221   :  { %1341 = vset.pattern.permute.xlu1 %v2789_v54  ;;  %1342 = vset.pattern.permute.xlu0 %v2789_v54 }
 0x222   :  { %994 = vperm.xlu1 %1341, %v613_v5   ;;  %999 = vperm.xlu0 %1342, %v614_v56   ;;  %v585_v56 = vmul.f32 2.0, %v577_v37  ;;  %v579_v5 = vsub.f32 %v379_v60, %v2793_v4  ;;  %v2456_v37 = vld [vmem:[#allocation2 + $0x60] sm:$0xff] }
 0x224   :  { %v587_v42 = vmul.f32 2.0, %v579_v5 }
 0x226   :  { %1004 = vperm.xlu1 %1341, %v615_v2   ;;  %1014 = vperm.xlu0 %1342, %v617_v59   ;;  %v2806_v59 = vld [vmem:[#allocation83_spill] sm:$0xff] }
 0x22a   :  { %1009 = vperm.xlu1 %1341, %v616_v34   ;;  %1024 = vperm.xlu0 %1342, %v619_v3   ;;  %v2807_v34 = vld [vmem:[#allocation84_spill] sm:$0xff] }
 0x22b   :  { %v2426_v3 = vld [vmem:[#allocation2 + $0x40] sm:$0xff] }
 0x22e   :  { %1019 = vperm.xlu1 %1341, %v618_v23   ;;  %1343 = vset.pattern.permute.xlu0 %v2798_v44  ;;  %v2430_v23 = vld [vmem:[#allocation2 + $0x8] sm:$0xff] }
 0x22f   :  { %1099 = vperm.xlu0 %1343, %v493_v33  }
 0x232   :  { %1029 = vperm.xlu1 %1341, %v620_v0   ;;  %v2436_v0 = vld [vmem:[#allocation2 + $0x50] sm:$0xff] }
 0x233   :  { %1114 = vperm.xlu0 %1343, %v496_v45   ;;  %v1368_v45 = vld [vmem:[%s2616_s1 + $0x38] sm:$0xff] }
 0x236   :  { %1344 = vset.pattern.permute.xlu1 %v2798_v44 }
 0x237   :  { %1104 = vperm.xlu1 %1344, %v494_v38   ;;  %1124 = vperm.xlu0 %1343, %v498_v6  }
 0x23b   :  { %1109 = vperm.xlu1 %1344, %v495_v39   ;;  %1134 = vperm.xlu0 %1343, %v500_v48  }
 0x23f   :  { %1119 = vperm.xlu1 %1344, %v497_v52   ;;  %1346 = vset.pattern.permute.xlu0 %v2789_v54 }
 0x240   :  { %1152 = vperm.xlu0 %1346, %v582_v25  }
 0x243   :  { %1129 = vperm.xlu1 %1344, %v499_v57  }
 0x244   :  { %1167 = vperm.xlu0 %1346, %v585_v56  }
 0x247   :  { %1345 = vset.pattern.permute.xlu1 %v2789_v54  ;;  %v588_v54 = vmul.f32 2.0, %v580_v24 }
 0x248   :  { %1147 = vperm.xlu1 %1345, %v581_v55   ;;  %1177 = vperm.xlu0 %1346, %v587_v42   ;;  %v2464_v55 = vld [vmem:[#allocation2 + $0x90] sm:$0xff]  ;;  %v2468_v42 = vld [vmem:[#allocation2 + $0x20] sm:$0xff] }
 0x24c   :  { %1157 = vperm.xlu1 %1345, %v583_v47   ;;  %1347 = vset.pattern.permute.xlu0 %v2798_v44 }
 0x24d   :  { %1203 = vperm.xlu0 %1347, %v2112_v28   ;;  %v2803_v28 = vld [vmem:[#allocation15_spill] sm:$0xff] }
 0x24e   :  { %v2804_v51 = vsub.f32 %v2803_v28, %v2074_v14  ;;  %v1367_v14 = vld [vmem:[%s2616_s1 + $0x30] sm:$0xff]  ;;  %v2811_v28 = vld [vmem:[#allocation17_spill] sm:$0xff]  ;;  %s1427_s1 = smov [#allocation5]  }
 0x24f   :  { %v679_v13 = vpop.permute.xlu1 %678  ;;  %s1311_s11 = sshll.u32 %s1427_s1, 4  ;;  %s1312_s11 = int_to_ptr.vmem [resolvable:$true] %s1311_s11 }
 0x250   :  { %1162 = vperm.xlu1 %1345, %v584_v7   ;;  %v674_v21 = vpop.permute.xlu0 %673  ;;  %v636_v19 = vadd.f32 %v2804_v51, %v2172_v29  ;;  %v712_v38 = vmul.f32 %v679_v13, %v2430_v23  ;;  %s1391_s12 = scalar_lea.vmem %s1312_s11, 3072  ;;  %p1396_p9 = scmp.lt.s32.totalorder %s1312_s11, %s1312_s11 }
 0x251   :  { %1218 = vperm.xlu0 %1347, %v2122_v32   ;;  %v711_v6 = vmul.f32 %v674_v21, %v2432_v8  ;;  %p1392_p8 = scmp.ne.s32.totalorder %s1312_s11, %s1391_s12  ;;  %p1397_p10 = scmp.lt.s32.totalorder %s1391_s12, %s1391_s12 }
 0x253   :  { %p1398_p11 = por %p1397_p10, %p1396_p9 }
 0x254   :  { %v684_v62 = vpop.permute.xlu1 %683  ;;  %1172 = vperm.xlu1 %1345, %v586_v12   ;;  %v689_v60 = vpop.permute.xlu0 %688 }
 0x255   :  { %1228 = vperm.xlu0 %1347, %v2148_v40   ;;  %v2805_v40 = vmov 2   ;;  %v713_v56 = vmul.f32 %v684_v62, %v2450_v27  ;;  %v714_v5 = vmul.f32 %v689_v60, %v2452_v61  ;;  %v2474_v60 = vld [vmem:[#allocation2 + $0x70] sm:$0xff]  ;;  %p1399_p12 = pnand %p1398_p11, %p1392_p8 }
 0x258   :  { %v2406_v2 = vpop.permute.xlu1 %693  ;;  %1182 = vperm.xlu1 %1345, %v588_v54   ;;  %v2408_v41 = vpop.permute.xlu0 %698  ;;  %v2476_v54 = vld [vmem:[#allocation2 + $0x78] sm:$0xff] }
 0x259   :  { %1238 = vperm.xlu0 %1347, %v636_v19   ;;  %v2812_v19 = vld [vmem:[#allocation32_spill] sm:$0xff] }
 0x25c   :  { %v2410_v32 = vpop.permute.xlu1 %703  ;;  %1348 = vset.pattern.permute.xlu1 %v2798_v44  ;;  %v2413_v49 = vpop.permute.xlu0 %708 }
 0x25d   :  { %1208 = vperm.xlu1 %1348, %v2102_v20   ;;  %1349 = vset.pattern.permute.xlu0 %v2805_v40  ;;  %v635_v20 = vadd.f32 %v2810_v50, %v2183_v1  ;;  %v2438_v1 = vld [vmem:[#allocation2 + $0x58] sm:$0xff] }
 0x25e   :  { %1282 = vperm.xlu0 %1349, %v1367_v14  }
 0x260   :  { %v722_v29 = vpop.permute.xlu1 %721  ;;  %v727_v63 = vpop.permute.xlu0 %726 }
 0x261   :  { %1213 = vperm.xlu1 %1348, %v2806_v59   ;;  %v759_v9 = vmul.f32 %v722_v29, %v2426_v3  ;;  %v760_v44 = vmul.f32 %v727_v63, %v2428_v36  ;;  %v715_v63 = vmul.f32 %v2406_v2, %v2468_v42  ;;  %v716_v59 = vmul.f32 %v2408_v41, %v2470_v10 }
 0x263   :  { %v767_v52 = vadd.f32 %v759_v9, %v711_v6  ;;  %v768_v25 = vadd.f32 %v760_v44, %v712_v38  ;;  %v2813_v44 = vld [vmem:[#allocation18_spill] sm:$0xff] }
 0x264   :  { %v732_v4 = vpop.permute.xlu1 %731  ;;  %v737_v35 = vpop.permute.xlu0 %736  ;;  %v2814_v38 = vld [vmem:[#allocation34_spill] sm:$0xff] }
 0x265   :  { %1223 = vperm.xlu1 %1348, %v2807_v34   ;;  %v761_v39 = vmul.f32 %v732_v4, %v2436_v0  ;;  %v762_v48 = vmul.f32 %v737_v35, %v2438_v1  ;;  %v2486_v4 = vld [vmem:[#allocation2 + $0xa0] sm:$0xff]  ;;  %v2488_v35 = vld [vmem:[#allocation2 + $0xa8] sm:$0xff]  ;;  %v2490_v34 = vld [vmem:[#allocation2 + $0x30] sm:$0xff] }
 0x267   :  { %v769_v30 = vadd.f32 %v761_v39, %v713_v56  ;;  %v770_v13 = vadd.f32 %v762_v48, %v714_v5 }
 0x268   :  { %v742_v31 = vpop.permute.xlu1 %741  ;;  %v747_v15 = vpop.permute.xlu0 %746 }
 0x269   :  { %1233 = vperm.xlu1 %1348, %v635_v20   ;;  %v763_v21 = vmul.f32 %v742_v31, %v2456_v37  ;;  %v764_v12 = vmul.f32 %v747_v15, %v2458_v17 }
 0x26b   :  { %v771_v20 = vadd.f32 %v763_v21, %v715_v63  ;;  %v772_v31 = vadd.f32 %v764_v12, %v716_v59 }
 0x26c   :  { %v752_v58 = vpop.permute.xlu1 %751  ;;  %v757_v33 = vpop.permute.xlu0 %756 }
 0x26d   :  { %1350 = vset.pattern.permute.xlu1 %v2805_v40  ;;  %v765_v2 = vmul.f32 %v752_v58, %v2474_v60  ;;  %v766_v41 = vmul.f32 %v757_v33, %v2476_v54  ;;  %v2508_v58 = vld [vmem:[#allocation2 + $0xb8] sm:$0xff] }
 0x26e   :  { %1286 = vperm.xlu1 %1350, %v1368_v45  }
 0x270   :  { %v778_v26 = vpop.permute.xlu1 %777  ;;  %v783_v16 = vpop.permute.xlu0 %782 }
 0x271   :  { %v815_v57 = vmul.f32 %v778_v26, %v2444_v18  ;;  %v816_v53 = vmul.f32 %v783_v16, %v2446_v11  ;;  %v717_v26 = vmul.f32 %v2410_v32, %v2490_v34  ;;  %v718_v16 = vmul.f32 %v2413_v49, %v2492_v22  ;;  %v2816_v32 = vld [vmem:[#allocation36_spill] sm:$0xff] }
 0x273   :  { %v823_v47 = vadd.f32 %v815_v57, %v767_v52  ;;  %v824_v7 = vadd.f32 %v816_v53, %v768_v25  ;;  %v2506_v52 = vld [vmem:[#allocation2 + $0xb0] sm:$0xff]  ;;  %v773_v57 = vadd.f32 %v765_v2, %v717_v26  ;;  %v774_v53 = vadd.f32 %v766_v41, %v718_v16 }
 0x274   :  { %v788_v24 = vpop.permute.xlu1 %787  ;;  %v793_v62 = vpop.permute.xlu0 %792 }
 0x275   :  { %v871_v51 = vadd.f32 %v2811_v28, %v823_v47  ;;  %v872_v40 = vadd.f32 %v2812_v19, %v824_v7  ;;  %v817_v14 = vmul.f32 %v788_v24, %v2464_v55  ;;  %v818_v29 = vmul.f32 %v793_v62, %v2466_v43  ;;  %v2815_v47 = vld [vmem:[#allocation19_spill] sm:$0xff]  ;;  %v2817_v28 = vld [vmem:[#allocation21_spill] sm:$0xff]  ;;  %v2818_v19 = vld [vmem:[#allocation38_spill] sm:$0xff] }
 0x277   :  { %880 = vst.msk [vmem:[#allocation5] sm:$0xff] %vm879_vm0, %v871_v51  ;;  %881 = vst.msk [vmem:[#allocation5 + $0x8] sm:$0xff] %vm879_vm0, %v872_v40  ;;  %v825_v46 = vadd.f32 %v817_v14, %v769_v30  ;;  %v826_v50 = vadd.f32 %v818_v29, %v770_v13 }
 0x278   :  { %v798_v15 = vpop.permute.xlu1 %797  ;;  %v803_v9 = vpop.permute.xlu0 %802 }
 0x279   :  { %v873_v45 = vadd.f32 %v2813_v44, %v825_v46  ;;  %v874_v6 = vadd.f32 %v2814_v38, %v826_v50  ;;  %v819_v39 = vmul.f32 %v798_v15, %v2486_v4  ;;  %v820_v48 = vmul.f32 %v803_v9, %v2488_v35 }
 0x27b   :  { %882 = vst.msk [vmem:[#allocation5 + $0x10] sm:$0xff] %vm879_vm0, %v873_v45  ;;  %883 = vst.msk [vmem:[#allocation5 + $0x18] sm:$0xff] %vm879_vm0, %v874_v6  ;;  %v827_v33 = vadd.f32 %v819_v39, %v771_v20  ;;  %v828_v25 = vadd.f32 %v820_v48, %v772_v31 }
 0x27c   :  { %v808_v56 = vpop.permute.xlu1 %807  ;;  %v813_v5 = vpop.permute.xlu0 %812 }
 0x27d   :  { %v875_v7 = vadd.f32 %v2815_v47, %v827_v33  ;;  %v876_v30 = vadd.f32 %v2816_v32, %v828_v25  ;;  %v821_v49 = vmul.f32 %v808_v56, %v2506_v52  ;;  %v822_v13 = vmul.f32 %v813_v5, %v2508_v58 }
 0x27f   :  { %884 = vst.msk [vmem:[#allocation5 + $0x20] sm:$0xff] %vm879_vm0, %v875_v7  ;;  %885 = vst.msk [vmem:[#allocation5 + $0x28] sm:$0xff] %vm879_vm0, %v876_v30  ;;  %v829_v21 = vadd.f32 %v821_v49, %v773_v57  ;;  %v830_v12 = vadd.f32 %v822_v13, %v774_v53 }
 0x280   :  { %v891_v24 = vpop.permute.xlu1 %890  ;;  %v896_v62 = vpop.permute.xlu0 %895 }
 0x281   :  { %v877_v51 = vadd.f32 %v2817_v28, %v829_v21  ;;  %v878_v40 = vadd.f32 %v2818_v19, %v830_v12  ;;  %v928_v39 = vmul.f32 %v891_v24, %v2432_v8  ;;  %v929_v48 = vmul.f32 %v896_v62, %v2430_v23  ;;  %v2819_v28 = vld [vmem:[#allocation20_spill] sm:$0xff]  ;;  %v2820_v19 = vld [vmem:[#allocation23_spill] sm:$0xff] }
 0x283   :  { %886 = vst.msk [vmem:[#allocation5 + $0x30] sm:$0xff] %vm879_vm0, %v877_v51  ;;  %887 = vst.msk [vmem:[#allocation5 + $0x38] sm:$0xff] %vm879_vm0, %v878_v40 }
 0x284   :  { %v901_v14 = vpop.permute.xlu1 %900  ;;  %v906_v29 = vpop.permute.xlu0 %905 }
 0x285   :  { %v930_v47 = vmul.f32 %v901_v14, %v2450_v27 }
 0x288   :  { %v911_v63 = vpop.permute.xlu1 %910  ;;  %v916_v59 = vpop.permute.xlu0 %915 }
 0x289   :  { %v932_v7 = vmul.f32 %v911_v63, %v2468_v42  ;;  %v931_v63 = vmul.f32 %v906_v29, %v2452_v61 }
 0x28c   :  { %v921_v46 = vpop.permute.xlu1 %920  ;;  %v926_v50 = vpop.permute.xlu0 %925 }
 0x290   :  { %v939_v20 = vpop.permute.xlu1 %938  ;;  %v944_v31 = vpop.permute.xlu0 %943 }
 0x291   :  { %v976_v38 = vmul.f32 %v939_v20, %v2426_v3  ;;  %v977_v6 = vmul.f32 %v944_v31, %v2428_v36  ;;  %v934_v31 = vmul.f32 %v921_v46, %v2490_v34 }
 0x293   :  { %v984_v57 = vadd.f32 %v976_v38, %v928_v39  ;;  %v985_v53 = vadd.f32 %v977_v6, %v929_v48  ;;  %v2821_v48 = vld [vmem:[#allocation22_spill] sm:$0xff] }
 0x294   :  { %v949_v2 = vpop.permute.xlu1 %948  ;;  %v954_v41 = vpop.permute.xlu0 %953 }
 0x295   :  { %v978_v26 = vmul.f32 %v949_v2, %v2436_v0  ;;  %v979_v13 = vmul.f32 %v954_v41, %v2438_v1 }
 0x297   :  { %v986_v49 = vadd.f32 %v978_v26, %v930_v47  ;;  %v2823_v47 = vld [vmem:[#allocation25_spill] sm:$0xff] }
 0x298   :  { %v959_v15 = vpop.permute.xlu1 %958  ;;  %v964_v9 = vpop.permute.xlu0 %963 }
 0x299   :  { %v980_v16 = vmul.f32 %v959_v15, %v2456_v37  ;;  %v987_v15 = vadd.f32 %v979_v13, %v931_v63 }
 0x29b   :  { %v988_v21 = vadd.f32 %v980_v16, %v932_v7  ;;  %v2822_v16 = vld [vmem:[#allocation24_spill] sm:$0xff] }
 0x29c   :  { %v969_v44 = vpop.permute.xlu1 %968  ;;  %v974_v45 = vpop.permute.xlu0 %973 }
 0x29d   :  { %v982_v12 = vmul.f32 %v969_v44, %v2474_v60  ;;  %v981_v44 = vmul.f32 %v964_v9, %v2458_v17 }
 0x29f   :  { %v990_v38 = vadd.f32 %v982_v12, %v934_v31 }
 0x2a1   :  { %v995_v33 = vpop.permute.xlu1 %994  ;;  %v1000_v25 = vpop.permute.xlu0 %999 }
 0x2a2   :  { %v1032_v56 = vmul.f32 %v995_v33, %v2444_v18  ;;  %v1033_v5 = vmul.f32 %v1000_v25, %v2446_v11  ;;  %v933_v25 = vmul.f32 %v916_v59, %v2470_v10 }
 0x2a4   :  { %v1040_v32 = vadd.f32 %v1032_v56, %v984_v57  ;;  %v1041_v30 = vadd.f32 %v1033_v5, %v985_v53  ;;  %v989_v9 = vadd.f32 %v981_v44, %v933_v25  ;;  %v983_v5 = vmul.f32 %v974_v45, %v2476_v54 }
 0x2a5   :  { %v1005_v24 = vpop.permute.xlu1 %1004  ;;  %v1015_v62 = vpop.permute.xlu0 %1014 }
 0x2a6   :  { %v1080_v51 = vadd.f32 %v2819_v28, %v1040_v32  ;;  %v1081_v40 = vadd.f32 %v2820_v19, %v1041_v30  ;;  %v1034_v20 = vmul.f32 %v1005_v24, %v2464_v55  ;;  %v1036_v14 = vmul.f32 %v1015_v62, %v2486_v4  ;;  %v2824_v32 = vld [vmem:[#allocation26_spill] sm:$0xff]  ;;  %v2825_v62 = vld [vmem:[#allocation27_spill] sm:$0xff] }
 0x2a8   :  { %1089 = vst.msk [vmem:[#allocation5 + $0x40] sm:$0xff] %vm879_vm0, %v1080_v51  ;;  %1090 = vst.msk [vmem:[#allocation5 + $0x48] sm:$0xff] %vm879_vm0, %v1081_v40  ;;  %v1042_v2 = vadd.f32 %v1034_v20, %v986_v49  ;;  %v1044_v41 = vadd.f32 %v1036_v14, %v988_v21  ;;  %v935_v21 = vmul.f32 %v926_v50, %v2492_v22  ;;  %v2826_v40 = vld [vmem:[#allocation29_spill] sm:$0xff] }
 0x2a9   :  { %v1010_v6 = vpop.permute.xlu1 %1009  ;;  %v1025_v39 = vpop.permute.xlu0 %1024 }
 0x2aa   :  { %v1082_v26 = vadd.f32 %v2821_v48, %v1042_v2  ;;  %v1084_v33 = vadd.f32 %v2822_v16, %v1044_v41  ;;  %v1035_v29 = vmul.f32 %v1010_v6, %v2466_v43  ;;  %v1038_v46 = vmul.f32 %v1025_v39, %v2506_v52 }
 0x2ab   :  { %v991_v24 = vadd.f32 %v983_v5, %v935_v21 }
 0x2ac   :  { %1091 = vst.msk [vmem:[#allocation5 + $0x50] sm:$0xff] %vm879_vm0, %v1082_v26  ;;  %1093 = vst.msk [vmem:[#allocation5 + $0x60] sm:$0xff] %vm879_vm0, %v1084_v33  ;;  %v1043_v57 = vadd.f32 %v1035_v29, %v987_v15  ;;  %v1046_v53 = vadd.f32 %v1038_v46, %v990_v38 }
 0x2ad   :  { %v1020_v56 = vpop.permute.xlu1 %1019 }
 0x2ae   :  { %v1083_v7 = vadd.f32 %v2823_v47, %v1043_v57  ;;  %v1086_v30 = vadd.f32 %v2824_v32, %v1046_v53  ;;  %v1037_v49 = vmul.f32 %v1020_v56, %v2488_v35  ;;  %v1100_v13 = vpop.permute.xlu0 %1099  ;;  %v2827_v56 = vld [vmem:[#allocation31_spill] sm:$0xff] }
 0x2af   :  { %v1137_v48 = vmul.f32 %v1100_v13, %v2432_v8 }
 0x2b0   :  { %1092 = vst.msk [vmem:[#allocation5 + $0x58] sm:$0xff] %vm879_vm0, %v1083_v7  ;;  %1095 = vst.msk [vmem:[#allocation5 + $0x70] sm:$0xff] %vm879_vm0, %v1086_v30  ;;  %v1045_v59 = vadd.f32 %v1037_v49, %v989_v9 }
 0x2b1   :  { %v1030_v12 = vpop.permute.xlu1 %1029 }
 0x2b2   :  { %v1085_v28 = vadd.f32 %v2825_v62, %v1045_v59  ;;  %v1039_v45 = vmul.f32 %v1030_v12, %v2508_v58  ;;  %v1115_v51 = vpop.permute.xlu0 %1114  ;;  %v2829_v12 = vld [vmem:[#allocation37_spill] sm:$0xff] }
 0x2b3   :  { %v1140_v57 = vmul.f32 %v1115_v51, %v2452_v61  ;;  %v2828_v61 = vld [vmem:[#allocation35_spill] sm:$0xff] }
 0x2b4   :  { %1094 = vst.msk [vmem:[#allocation5 + $0x68] sm:$0xff] %vm879_vm0, %v1085_v28  ;;  %v1047_v19 = vadd.f32 %v1039_v45, %v991_v24 }
 0x2b6   :  { %v1087_v20 = vadd.f32 %v2826_v40, %v1047_v19  ;;  %v1105_v14 = vpop.permute.xlu1 %1104  ;;  %v1125_v63 = vpop.permute.xlu0 %1124 }
 0x2b7   :  { %v1142_v8 = vmul.f32 %v1125_v63, %v2470_v10  ;;  %v1138_v62 = vmul.f32 %v1105_v14, %v2430_v23 }
 0x2b8   :  { %1096 = vst.msk [vmem:[#allocation5 + $0x78] sm:$0xff] %vm879_vm0, %v1087_v20 }
 0x2ba   :  { %v1110_v50 = vpop.permute.xlu1 %1109  ;;  %v1135_v31 = vpop.permute.xlu0 %1134 }
 0x2bb   :  { %v1139_v45 = vmul.f32 %v1110_v50, %v2450_v27 }
 0x2be   :  { %v1120_v2 = vpop.permute.xlu1 %1119 }
 0x2bf   :  { %v1153_v41 = vpop.permute.xlu0 %1152  ;;  %v1141_v23 = vmul.f32 %v1120_v2, %v2468_v42 }
 0x2c2   :  { %v1130_v15 = vpop.permute.xlu1 %1129 }
 0x2c3   :  { %v1168_v44 = vpop.permute.xlu0 %1167 }
 0x2c4   :  { %v1189_v40 = vmul.f32 %v1168_v44, %v2456_v37  ;;  %v1144_v44 = vmul.f32 %v1135_v31, %v2492_v22 }
 0x2c7   :  { %v1148_v38 = vpop.permute.xlu1 %1147  ;;  %v1178_v6 = vpop.permute.xlu0 %1177 }
 0x2c8   :  { %v1185_v39 = vmul.f32 %v1148_v38, %v2426_v3  ;;  %v1191_v27 = vmul.f32 %v1178_v6, %v2474_v60 }
 0x2ca   :  { %v1193_v33 = vadd.f32 %v1185_v39, %v1137_v48  ;;  %v2831_v39 = vld [vmem:[#allocation33_spill] sm:$0xff] }
 0x2cb   :  { %v1158_v26 = vpop.permute.xlu1 %1157 }
 0x2cc   :  { %v1204_v16 = vpop.permute.xlu0 %1203  ;;  %v1187_v28 = vmul.f32 %v1158_v26, %v2436_v0 }
 0x2cd   :  { %v1241_v29 = vmul.f32 %v1204_v16, %v2444_v18 }
 0x2ce   :  { %v1195_v20 = vadd.f32 %v1187_v28, %v1139_v45 }
 0x2cf   :  { %v1249_v46 = vadd.f32 %v1241_v29, %v1193_v33  ;;  %v1163_v25 = vpop.permute.xlu1 %1162  ;;  %v2832_v33 = vld [vmem:[#allocation30_spill] sm:$0xff] }
 0x2d0   :  { %v1188_v53 = vmul.f32 %v1163_v25, %v2438_v1  ;;  %v1219_v9 = vpop.permute.xlu0 %1218 }
 0x2d1   :  { %v1289_v5 = vadd.f32 %v2827_v56, %v1249_v46  ;;  %v1244_v47 = vmul.f32 %v1219_v9, %v2466_v43  ;;  %v1186_v43 = vmul.f32 %v1153_v41, %v2428_v36  ;;  %v2830_v36 = vld [vmem:[#allocation28_spill] sm:$0xff] }
 0x2d2   :  { %v1196_v7 = vadd.f32 %v1188_v53, %v1140_v57 }
 0x2d3   :  { %1298 = vst.msk [vmem:[#allocation5 + $0x80] sm:$0xff] %vm879_vm0, %v1289_v5  ;;  %v1173_v3 = vpop.permute.xlu1 %1172 }
 0x2d4   :  { %v1252_v32 = vadd.f32 %v1244_v47, %v1196_v7  ;;  %v1190_v18 = vmul.f32 %v1173_v3, %v2458_v17  ;;  %v1229_v30 = vpop.permute.xlu0 %1228  ;;  %v1194_v17 = vadd.f32 %v1186_v43, %v1138_v62 }
 0x2d5   :  { %v1246_v49 = vmul.f32 %v1229_v30, %v2488_v35 }
 0x2d6   :  { %v1292_v13 = vadd.f32 %v2828_v61, %v1252_v32  ;;  %v1198_v1 = vadd.f32 %v1190_v18, %v1142_v8 }
 0x2d7   :  { %v1183_v21 = vpop.permute.xlu1 %1182 }
 0x2d8   :  { %1301 = vst.msk [vmem:[#allocation5 + $0x98] sm:$0xff] %vm879_vm0, %v1292_v13  ;;  %v1254_v59 = vadd.f32 %v1246_v49, %v1198_v1  ;;  %v1192_v0 = vmul.f32 %v1183_v21, %v2476_v54  ;;  %v1239_v50 = vpop.permute.xlu0 %1238 }
 0x2d9   :  { %v1248_v26 = vmul.f32 %v1239_v50, %v2508_v58 }
 0x2da   :  { %v1294_v24 = vadd.f32 %v2829_v12, %v1254_v59  ;;  %v1200_v2 = vadd.f32 %v1192_v0, %v1144_v44 }
 0x2dc   :  { %1303 = vst.msk [vmem:[#allocation5 + $0xa8] sm:$0xff] %vm879_vm0, %v1294_v24  ;;  %v1209_v10 = vpop.permute.xlu1 %1208  ;;  %v1256_v22 = vadd.f32 %v1248_v26, %v1200_v2 }
 0x2dd   :  { %v1242_v35 = vmul.f32 %v1209_v10, %v2446_v11  ;;  %v1197_v11 = vadd.f32 %v1189_v40, %v1141_v23  ;;  %v1283_v6 = vpop.permute.xlu0 %1282 }
 0x2df   :  { %v1250_v51 = vadd.f32 %v1242_v35, %v1194_v17 }
 0x2e0   :  { %v1214_v19 = vpop.permute.xlu1 %1213 }
 0x2e1   :  { %v1290_v63 = vadd.f32 %v2830_v36, %v1250_v51  ;;  %v1243_v41 = vmul.f32 %v1214_v19, %v2464_v55  ;;  %v1143_v55 = vmul.f32 %v1130_v15, %v2490_v34 }
 0x2e3   :  { %1299 = vst.msk [vmem:[#allocation5 + $0x88] sm:$0xff] %vm879_vm0, %v1290_v63  ;;  %v1251_v14 = vadd.f32 %v1243_v41, %v1195_v20  ;;  %v1199_v16 = vadd.f32 %v1191_v27, %v1143_v55 }
 0x2e4   :  { %v1224_v38 = vpop.permute.xlu1 %1223 }
 0x2e5   :  { %v1291_v48 = vadd.f32 %v2831_v39, %v1251_v14  ;;  %v1245_v37 = vmul.f32 %v1224_v38, %v2486_v4 }
 0x2e7   :  { %1300 = vst.msk [vmem:[#allocation5 + $0x90] sm:$0xff] %vm879_vm0, %v1291_v48  ;;  %v1253_v42 = vadd.f32 %v1245_v37, %v1197_v11 }
 0x2e8   :  { %v1234_v54 = vpop.permute.xlu1 %1233 }
 0x2e9   :  { %v1293_v29 = vadd.f32 %v2832_v33, %v1253_v42  ;;  %v1247_v60 = vmul.f32 %v1234_v54, %v2506_v52 }
 0x2eb   :  { %1302 = vst.msk [vmem:[#allocation5 + $0xa0] sm:$0xff] %vm879_vm0, %v1293_v29  ;;  %v1255_v4 = vadd.f32 %v1247_v60, %v1199_v16 }
 0x2ed   :  { %v1295_v34 = vadd.f32 %v1283_v6, %v1255_v4  ;;  %v1287_v31 = vpop.permute.xlu1 %1286 }
 0x2ee   :  { %v1296_v15 = vadd.f32 %v1287_v31, %v1256_v22 }
 0x2ef   :  { %1304 = vst.msk [vmem:[#allocation5 + $0xb0] sm:$0xff] %vm879_vm0, %v1295_v34 }
 0x2f0   :  { %1305 = vst.msk [vmem:[#allocation5 + $0xb8] sm:$0xff] %vm879_vm0, %v1296_v15 }
 0x2f1   :  { %1402 = shalt.err (!%p1399_p12)
}
 0x2f2   :  { %s1403_s0 = scalar_lea.hbm %s2618_s3, 3072 }
 0x2f3   :  { %p1404_p13 = scmp.ne.s32.totalorder %s2618_s3, %s1403_s0  ;;  %p1407_p0 = scmp.lt.u32.totalorder %s1403_s0, %s2618_s3 }
 0x2f5   :  { %p1409_p1 = pnand %p1407_p0, %p1404_p13 }
 0x2f7   :  { %1412 = shalt.err (!%p1409_p1)
}
 0x2f8   :  { %1317 = dma.vmem_to_hbm [thread:$0]  %s1312_s11, 3072, %s2618_s3, [#allocation4], %s1418_s22, %s1418_s22, %s1419_s23  }
 0x2f9   :  { %1415 = dma.done.wait [#allocation4], 3072  }
 0x2fa   :  { %1416 = vsyncadd [#allocation4], 4294964224 }
 0x2fb   :  { %1321 = vsyncpa [#allocation3], 1 }
 0x2fc   :  { %1322 = vsyncpa [#allocation4], 1 }

</bundles_post_ra>
